<compile_context>
chip_gen: v7x
topology: tpu7x:2x2x1
jax: 0.10.0
libtpu: 0.0.40
codegen_flags: <defaults>
</compile_context>

<pallas_src>
import functools

import jax
import jax.numpy as jnp
from jax.experimental import pallas as pl
from jax.experimental.pallas import tpu as pltpu


# ------------------------------ fused kernel --------------------------------

def _fused_block_kernel(x_ref, w1_ref, w2_ref, b1_ref, b2_ref,
                        out_ref, pad_ref, *, H, W, C2, NB, mxu_dtype):
    """NB batch samples per program, both streams packed along channels (2C)."""
    M = NB * H * W

    # ---- halo: zero only the 1-pixel border (once per program). The interior
    # is fully rewritten before every conv stage, so only the border must stay
    # zero.  Per-program (not pl.when(pid==0)) so it stays correct when the
    # "parallel" grid is split across TensorCores.
    zrow = jnp.zeros((NB, 1, W + 2, C2), jnp.float32)
    zcol = jnp.zeros((NB, H + 2, 1, C2), jnp.float32)
    pad_ref[:, 0:1, :, :] = zrow
    pad_ref[:, H + 1:H + 2, :, :] = zrow
    pad_ref[:, :, 0:1, :] = zcol
    pad_ref[:, :, W + 1:W + 2, :] = zcol

    # Hoisted per-channel bias vectors (read once per program).
    b1 = b1_ref[...]                                  # (1, 2C) f32
    b2 = b2_ref[...]                                  # (1, 2C) f32

    def conv3x3(inp_nhwc, w_ref):
        """3x3 'same' conv of the packed (NB,H,W,2C) tile as 9 accumulating
        MXU dots (no materialized im2col).  Weights already carry the folded
        BN scale (and, for conv2, the folded channel-exchange)."""
        pad_ref[:, 1:H + 1, 1:W + 1, :] = inp_nhwc
        acc = jnp.zeros((M, C2), jnp.float32)
        for dy in range(3):
            for dx in range(3):
                tap = pad_ref[:, dy:dy + H, dx:dx + W, :].reshape(M, C2)
                acc = acc + jnp.dot(tap.astype(mxu_dtype),
                                    w_ref[dy * 3 + dx],
                                    preferred_element_type=jnp.float32)
        return acc                                    # (M, 2C) f32

    x = x_ref[...]                                    # (NB, H, W, 2C) f32

    # conv1 + bn1 (scale folded into w1 columns, bias here) + ReLU.
    # The channel exchange itself is folded into w2's rows, so nothing more
    # to do here.
    z = jnp.maximum(conv3x3(x, w1_ref) + b1, 0.0)     # (M, 2C)

    # conv2 + bn2 + identity-downsample residual + ReLU (all epilogue math f32).
    y = conv3x3(z.reshape(NB, H, W, C2), w2_ref) + b2 + x.reshape(M, C2)
    y = jnp.maximum(y, 0.0).reshape(NB, H, W, C2).astype(out_ref.dtype)

    # Assemble the 128-lane-dense output block (NB, H, W*2C) in VMEM: W cheap
    # masked lane-slice stores here, but the HBM writeback of the block is a
    # dense, unmasked (8,128)-tiled store (the lane-dense out_spec lever).
    for w in range(W):
        out_ref[:, :, w * C2:(w + 1) * C2] = y[:, :, w, :]


# -------------------------------- wrappers -----------------------------------

def _fold_bn(gamma, beta, mean, var, eps=1e-5):
    scale = gamma / jnp.sqrt(var + eps)
    bias = beta - mean * scale
    return scale, bias


def _pack_w1(w_t, w_f, s_t, s_f):
    """Two HWIO (3,3,C,C) conv1 weights, BN1 scale folded into output columns,
    packed block-diagonally over the two streams -> (9, 2C, 2C) per-tap."""
    C = w_t.shape[2]
    zer = jnp.zeros_like(w_t)
    top = jnp.concatenate([w_t * s_t, zer], axis=3)   # packed-in rows 0..C-1
    bot = jnp.concatenate([zer, w_f * s_f], axis=3)   # packed-in rows C..2C-1
    w = jnp.concatenate([top, bot], axis=2)           # (3,3,2C,2C)
    return w.reshape(9, 2 * C, 2 * C)


def _pack_w2(w_t, w_f, s_t, s_f, keep_t, keep_f):
    """Conv2 weights with BN2 scale folded into the output columns AND the CEN
    channel-exchange folded into the packed input rows.

    conv2 consumes z_ex where z_ex[:, i] = z[:, sigma(i)] (z = relu(bn1 conv1),
    packed); therefore z_ex @ W2 == z @ W2' with W2'[j] = sum_{i: sigma(i)=j} W2[i].
    The per-(i) row blocks live in disjoint output columns, so the fold is an
    exact copy/merge (no fp additions of nonzeros)."""
    C = w_t.shape[2]
    zer = jnp.zeros_like(w_t)
    top = jnp.concatenate([w_t * s_t, zer], axis=3)
    bot = jnp.concatenate([zer, w_f * s_f], axis=3)
    w = jnp.concatenate([top, bot], axis=2)           # (3,3,2C,2C)
    ar = jnp.arange(C)
    sigma = jnp.concatenate([jnp.where(keep_t, ar, ar + C),      # t-half rows
                             jnp.where(keep_f, ar + C, ar)])     # f-half rows
    w_folded = jnp.zeros_like(w).at[:, :, sigma, :].add(w)
    return w_folded.reshape(9, 2 * C, 2 * C)


def _choose_batch_block(N, H, W, C2, vmem_budget_bytes=8 << 20):
    """Pick NB samples/program: amortize per-grid-step overhead while keeping
    >= 2 programs (for the 2 TensorCores on v7x) and fitting a VMEM budget."""
    per_sample = 4 * (2 * H * W * C2               # input + output blocks
                      + (H + 2) * (W + 2) * C2     # halo scratch
                      + 4 * H * W * C2)            # in-flight f32 temporaries
    nb = int(max(1, min(N, vmem_budget_bytes // max(per_sample, 1))))
    if N >= 2:
        nb = min(nb, max(1, N // 2))
    while N % nb:
        nb -= 1
    return nb


def basic_block_fusion(x_t_nchw, x_f_nchw, params, bn_threshold=0.02,
                       mxu_dtype=jnp.bfloat16, batch_block=None):
    """Forward of BasicBlockFusion (stride=1, in_planes==planes).

    mxu_dtype: MXU operand dtype. bf16 (default) gives ~2-3x MXU throughput on
    v6e/v7x with f32 accumulation and an all-f32 epilogue; pass jnp.float32 for
    exact parity with the f32 reference.
    """
    N, C, H, W = x_t_nchw.shape
    C2 = 2 * C

    # Layout plumbing stays wrapper-side: NCHW -> NHWC and pack both streams
    # along channels so the kernel gets ONE image operand per program.
    x_t = jnp.transpose(x_t_nchw, (0, 2, 3, 1))
    x_f = jnp.transpose(x_f_nchw, (0, 2, 3, 1))
    x_pack = jnp.concatenate([x_t, x_f], axis=-1)            # (N, H, W, 2C)

    # Fold BN running stats; the scale goes into the conv weights, only the
    # bias stays as an in-kernel epilogue vector.
    s1t, b1t = _fold_bn(*params['bn1'])
    s1f, b1f = _fold_bn(*params['bn1_f'])
    s2t, b2t = _fold_bn(*params['bn2'])
    s2f, b2f = _fold_bn(*params['bn2_f'])

    # CEN exchange mask from |gamma_bn1| (True = keep own channel).
    keep_t = jnp.abs(params['bn1'][0]) >= bn_threshold
    keep_f = jnp.abs(params['bn1_f'][0]) >= bn_threshold

    w1 = _pack_w1(params['w1'], params['w1_f'], s1t, s1f).astype(mxu_dtype)
    w2 = _pack_w2(params['w2'], params['w2_f'], s2t, s2f,
                  keep_t, keep_f).astype(mxu_dtype)

    b1 = jnp.concatenate([b1t, b1f]).reshape(1, C2).astype(jnp.float32)
    b2 = jnp.concatenate([b2t, b2f]).reshape(1, C2).astype(jnp.float32)

    nb = _choose_batch_block(N, H, W, C2) if batch_block is None else batch_block
    assert N % nb == 0, "batch_block must divide the batch size"

    kernel = functools.partial(_fused_block_kernel, H=H, W=W, C2=C2, NB=nb,
                               mxu_dtype=mxu_dtype)

    out_dense = pl.pallas_call(
        kernel,
        out_shape=jax.ShapeDtypeStruct((N, H, W * C2), jnp.float32),
        grid=(N // nb,),
        in_specs=[
            pl.BlockSpec((nb, H, W, C2), lambda n: (n, 0, 0, 0)),   # packed x
            pl.BlockSpec((9, C2, C2), lambda n: (0, 0, 0)),          # w1 (per tap)
            pl.BlockSpec((9, C2, C2), lambda n: (0, 0, 0)),          # w2 (per tap)
            pl.BlockSpec((1, C2), lambda n: (0, 0)),                 # bias1
            pl.BlockSpec((1, C2), lambda n: (0, 0)),                 # bias2
        ],
        out_specs=pl.BlockSpec((nb, H, W * C2), lambda n: (n, 0, 0)),
        scratch_shapes=[pltpu.VMEM((nb, H + 2, W + 2, C2), jnp.float32)],
        compiler_params=pltpu.CompilerParams(
            dimension_semantics=("parallel",)),
    )(x_pack, w1, w2, b1, b2)

    # Unpack the lane-dense slab, split the streams and return NCHW.
    out = out_dense.reshape(N, H, W, C2)
    out_t = jnp.transpose(out[..., :C], (0, 3, 1, 2))
    out_f = jnp.transpose(out[..., C:], (0, 3, 1, 2))
    return out_t, out_f


# ----------------------------- pure-JAX reference ----------------------------

def _ref_forward(x_t_nchw, x_f_nchw, params, bn_threshold=0.02):
    def conv(x, w):
        return jax.lax.conv_general_dilated(
            x, w, (1, 1), 'SAME', dimension_numbers=('NHWC', 'HWIO', 'NHWC'))

    x_t = jnp.transpose(x_t_nchw, (0, 2, 3, 1))
    x_f = jnp.transpose(x_f_nchw, (0, 2, 3, 1))
    s1t, b1t = _fold_bn(*params['bn1'])
    s1f, b1f = _fold_bn(*params['bn1_f'])
    s2t, b2t = _fold_bn(*params['bn2'])
    s2f, b2f = _fold_bn(*params['bn2_f'])

    out_t = conv(x_t, params['w1']) * s1t + b1t
    out_f = conv(x_f, params['w1_f']) * s1f + b1f
    keep_t = jnp.abs(params['bn1'][0]) >= bn_threshold
    keep_f = jnp.abs(params['bn1_f'][0]) >= bn_threshold
    new_t = jnp.where(keep_t, out_t, out_f)
    new_f = jnp.where(keep_f, out_f, out_t)
    out_t, out_f = jax.nn.relu(new_t), jax.nn.relu(new_f)
    out_t = conv(out_t, params['w2']) * s2t + b2t + x_t
    out_f = conv(out_f, params['w2_f']) * s2f + b2f + x_f
    out_t, out_f = jax.nn.relu(out_t), jax.nn.relu(out_f)
    return (jnp.transpose(out_t, (0, 3, 1, 2)),
            jnp.transpose(out_f, (0, 3, 1, 2)))


# ----------------------------------- main -------------------------------------

if __name__ == "__main__":
    N, C, H, W = 4, 8, 8, 8          # batch, in_planes == planes, spatial
    key = jax.random.PRNGKey(0)
    ks = jax.random.split(key, 8)
    x_t = jax.random.normal(ks[0], (N, C, H, W), jnp.float32)
    x_f = jax.random.normal(ks[1], (N, C, H, W), jnp.float32)

    def bn_params(k, gamma):
        kb, km, kv = jax.random.split(k, 3)
        beta = 0.1 * jax.random.normal(kb, (C,), jnp.float32)
        mean = 0.1 * jax.random.normal(km, (C,), jnp.float32)
        var = jax.random.uniform(kv, (C,), jnp.float32, minval=0.5, maxval=1.5)
        return (gamma, beta, mean, var)

    # bn1 gammas chosen so some channels fall below the 0.02 exchange threshold.
    gamma1_t = jnp.array([0.5, 0.01, 0.7, 0.005, 0.9, 1.1, 0.3, 0.015], jnp.float32)
    gamma1_f = jnp.array([0.01, 0.8, 0.6, 0.4, 0.003, 1.0, 0.018, 0.5], jnp.float32)
    gamma2_t = jnp.array([1.0, 0.9, 1.1, 0.8, 1.2, 0.7, 1.05, 0.95], jnp.float32)
    gamma2_f = jnp.array([0.95, 1.05, 0.7, 1.2, 0.8, 1.1, 0.9, 1.0], jnp.float32)

    params = {
        'w1':   0.1 * jax.random.normal(ks[2], (3, 3, C, C), jnp.float32),
        'w1_f': 0.1 * jax.random.normal(ks[3], (3, 3, C, C), jnp.float32),
        'w2':   0.1 * jax.random.normal(ks[4], (3, 3, C, C), jnp.float32),
        'w2_f': 0.1 * jax.random.normal(ks[5], (3, 3, C, C), jnp.float32),
        'bn1':   bn_params(ks[6], gamma1_t),
        'bn1_f': bn_params(ks[7], gamma1_f),
        'bn2':   bn_params(jax.random.PRNGKey(42), gamma2_t),
        'bn2_f': bn_params(jax.random.PRNGKey(43), gamma2_f),
    }

    ref_t, ref_f = _ref_forward(x_t, x_f, params)

    # 1) Exact-parity mode (f32 MXU operands) -- tight tolerance.
    out_t32, out_f32 = basic_block_fusion(x_t, x_f, params,
                                          mxu_dtype=jnp.float32)
    jax.block_until_ready((out_t32, out_f32))
    assert jnp.allclose(out_t32, ref_t, atol=1e-4), \
        float(jnp.max(jnp.abs(out_t32 - ref_t)))
    assert jnp.allclose(out_f32, ref_f, atol=1e-4), \
        float(jnp.max(jnp.abs(out_f32 - ref_f)))

    # 2) Default production mode (bf16 MXU operands, f32 accumulation/epilogue)
    #    -- tolerance loosened for bf16 input/weight rounding only.
    out_t, out_f = basic_block_fusion(x_t, x_f, params)
    jax.block_until_ready((out_t, out_f))
    assert jnp.allclose(out_t, ref_t, atol=8e-2, rtol=2e-2), \
        float(jnp.max(jnp.abs(out_t - ref_t)))
    assert jnp.allclose(out_f, ref_f, atol=8e-2, rtol=2e-2), \
        float(jnp.max(jnp.abs(out_f - ref_f)))

    print("KERNEL_OK")
</pallas_src>

<mosaic_0001>
module attributes {stable_mosaic.version = 11 : i64} {
  func.func @_fused_block_kernel(%arg0: i32, %arg1: memref<2x8x8x16xf32, #tpu.memory_space<vmem>>, %arg2: memref<9x16x16xf32, #tpu.memory_space<vmem>>, %arg3: memref<9x16x16xf32, #tpu.memory_space<vmem>>, %arg4: memref<1x16xf32, #tpu.memory_space<vmem>>, %arg5: memref<1x16xf32, #tpu.memory_space<vmem>>, %arg6: memref<2x8x128xf32, #tpu.memory_space<vmem>>, %arg7: memref<2x10x10x16xf32, #tpu.memory_space<vmem>>) attributes {dimension_semantics = [#tpu.dimension_semantics<parallel>], iteration_bounds = array<i64: 2>, scalar_prefetch = 0 : i64, scratch_operands = 1 : i64, tpu.core_type = #tpu.core_type<tc>, window_params = [{transform_indices = @transform_0, window_bounds = array<i64: 2, 8, 8, 16>}, {pipeline_mode = #tpu.pipeline_mode<synchronous>, transform_indices = @transform_1, window_bounds = array<i64: 9, 16, 16>}, {pipeline_mode = #tpu.pipeline_mode<synchronous>, transform_indices = @transform_2, window_bounds = array<i64: 9, 16, 16>}, {pipeline_mode = #tpu.pipeline_mode<synchronous>, transform_indices = @transform_3, window_bounds = array<i64: 1, 16>}, {pipeline_mode = #tpu.pipeline_mode<synchronous>, transform_indices = @transform_4, window_bounds = array<i64: 1, 16>}, {transform_indices = @transform_5, window_bounds = array<i64: 2, 8, 128>}]} {
    %cst = arith.constant 0.000000e+00 : f32
    %0 = vector.broadcast %cst : f32 to vector<2x1x10x16xf32>
    %cst_0 = arith.constant 0.000000e+00 : f32
    %1 = vector.broadcast %cst_0 : f32 to vector<2x10x1x16xf32>
    %c0 = arith.constant 0 : index
    %c0_1 = arith.constant 0 : index
    %c0_2 = arith.constant 0 : index
    %c0_3 = arith.constant 0 : index
    %2 = vector.load %arg7[%c0, %c0_1, %c0_2, %c0_3] : memref<2x10x10x16xf32, #tpu.memory_space<vmem>>, vector<2x1x10x16xf32>
    tpu.vector_store %arg7[%c0, %c0_1, %c0_2, %c0_3], %0 {strides = array<i32>} : memref<2x10x10x16xf32, #tpu.memory_space<vmem>>, vector<2x1x10x16xf32>,
    %c0_4 = arith.constant 0 : index
    %c9 = arith.constant 9 : index
    %c0_5 = arith.constant 0 : index
    %c0_6 = arith.constant 0 : index
    %3 = vector.load %arg7[%c0_4, %c9, %c0_5, %c0_6] : memref<2x10x10x16xf32, #tpu.memory_space<vmem>>, vector<2x1x10x16xf32>
    tpu.vector_store %arg7[%c0_4, %c9, %c0_5, %c0_6], %0 {strides = array<i32>} : memref<2x10x10x16xf32, #tpu.memory_space<vmem>>, vector<2x1x10x16xf32>,
    %c0_7 = arith.constant 0 : index
    %c0_8 = arith.constant 0 : index
    %c0_9 = arith.constant 0 : index
    %c0_10 = arith.constant 0 : index
    %4 = vector.load %arg7[%c0_7, %c0_8, %c0_9, %c0_10] : memref<2x10x10x16xf32, #tpu.memory_space<vmem>>, vector<2x10x1x16xf32>
    tpu.vector_store %arg7[%c0_7, %c0_8, %c0_9, %c0_10], %1 {strides = array<i32>} : memref<2x10x10x16xf32, #tpu.memory_space<vmem>>, vector<2x10x1x16xf32>,
    %c0_11 = arith.constant 0 : index
    %c0_12 = arith.constant 0 : index
    %c9_13 = arith.constant 9 : index
    %c0_14 = arith.constant 0 : index
    %5 = vector.load %arg7[%c0_11, %c0_12, %c9_13, %c0_14] : memref<2x10x10x16xf32, #tpu.memory_space<vmem>>, vector<2x10x1x16xf32>
    tpu.vector_store %arg7[%c0_11, %c0_12, %c9_13, %c0_14], %1 {strides = array<i32>} : memref<2x10x10x16xf32, #tpu.memory_space<vmem>>, vector<2x10x1x16xf32>,
    %c0_15 = arith.constant 0 : index
    %c0_16 = arith.constant 0 : index
    %6 = vector.load %arg4[%c0_15, %c0_16] : memref<1x16xf32, #tpu.memory_space<vmem>>, vector<1x16xf32>
    %c0_17 = arith.constant 0 : index
    %c0_18 = arith.constant 0 : index
    %7 = vector.load %arg5[%c0_17, %c0_18] : memref<1x16xf32, #tpu.memory_space<vmem>>, vector<1x16xf32>
    %c0_19 = arith.constant 0 : index
    %c0_20 = arith.constant 0 : index
    %c0_21 = arith.constant 0 : index
    %c0_22 = arith.constant 0 : index
    %8 = vector.load %arg1[%c0_19, %c0_20, %c0_21, %c0_22] : memref<2x8x8x16xf32, #tpu.memory_space<vmem>>, vector<2x8x8x16xf32>
    %c0_23 = arith.constant 0 : index
    %c1 = arith.constant 1 : index
    %c1_24 = arith.constant 1 : index
    %c0_25 = arith.constant 0 : index
    %9 = vector.load %arg7[%c0_23, %c1, %c1_24, %c0_25] : memref<2x10x10x16xf32, #tpu.memory_space<vmem>>, vector<2x8x8x16xf32>
    tpu.vector_store %arg7[%c0_23, %c1, %c1_24, %c0_25], %8 {strides = array<i32>} : memref<2x10x10x16xf32, #tpu.memory_space<vmem>>, vector<2x8x8x16xf32>,
    %cst_26 = arith.constant 0.000000e+00 : f32
    %10 = vector.broadcast %cst_26 : f32 to vector<128x16xf32>
    %c0_27 = arith.constant 0 : index
    %c0_28 = arith.constant 0 : index
    %c0_29 = arith.constant 0 : index
    %c0_30 = arith.constant 0 : index
    %11 = vector.load %arg7[%c0_27, %c0_28, %c0_29, %c0_30] : memref<2x10x10x16xf32, #tpu.memory_space<vmem>>, vector<2x8x8x16xf32>
    %12 = vector.shape_cast %11 : vector<2x8x8x16xf32> to vector<128x16xf32>
    %c0_31 = arith.constant 0 : index
    %c0_32 = arith.constant 0 : index
    %c0_33 = arith.constant 0 : index
    %13 = vector.load %arg2[%c0_31, %c0_32, %c0_33] : memref<9x16x16xf32, #tpu.memory_space<vmem>>, vector<1x16x16xf32>
    %14 = vector.shape_cast %13 : vector<1x16x16xf32> to vector<16x16xf32>
    %cst_34 = arith.constant dense<0.000000e+00> : vector<128x16xf32>
    %15 = tpu.matmul %12, %14, %cst_34 {dimension_numbers = #tpu.dot_dimension_numbers<[1], [0], [0], [1], [0, 0, 1, 1], [], []>} : vector<128x16xf32>, vector<16x16xf32>, vector<128x16xf32> -> vector<128x16xf32>
    %16 = arith.addf %10, %15 : vector<128x16xf32>
    %c0_35 = arith.constant 0 : index
    %c0_36 = arith.constant 0 : index
    %c1_37 = arith.constant 1 : index
    %c0_38 = arith.constant 0 : index
    %17 = vector.load %arg7[%c0_35, %c0_36, %c1_37, %c0_38] : memref<2x10x10x16xf32, #tpu.memory_space<vmem>>, vector<2x8x8x16xf32>
    %18 = vector.shape_cast %17 : vector<2x8x8x16xf32> to vector<128x16xf32>
    %c1_39 = arith.constant 1 : index
    %c0_40 = arith.constant 0 : index
    %c0_41 = arith.constant 0 : index
    %19 = vector.load %arg2[%c1_39, %c0_40, %c0_41] : memref<9x16x16xf32, #tpu.memory_space<vmem>>, vector<1x16x16xf32>
    %20 = vector.shape_cast %19 : vector<1x16x16xf32> to vector<16x16xf32>
    %cst_42 = arith.constant dense<0.000000e+00> : vector<128x16xf32>
    %21 = tpu.matmul %18, %20, %cst_42 {dimension_numbers = #tpu.dot_dimension_numbers<[1], [0], [0], [1], [0, 0, 1, 1], [], []>} : vector<128x16xf32>, vector<16x16xf32>, vector<128x16xf32> -> vector<128x16xf32>
    %22 = arith.addf %16, %21 : vector<128x16xf32>
    %c0_43 = arith.constant 0 : index
    %c0_44 = arith.constant 0 : index
    %c2 = arith.constant 2 : index
    %c0_45 = arith.constant 0 : index
    %23 = vector.load %arg7[%c0_43, %c0_44, %c2, %c0_45] : memref<2x10x10x16xf32, #tpu.memory_space<vmem>>, vector<2x8x8x16xf32>
    %24 = vector.shape_cast %23 : vector<2x8x8x16xf32> to vector<128x16xf32>
    %c2_46 = arith.constant 2 : index
    %c0_47 = arith.constant 0 : index
    %c0_48 = arith.constant 0 : index
    %25 = vector.load %arg2[%c2_46, %c0_47, %c0_48] : memref<9x16x16xf32, #tpu.memory_space<vmem>>, vector<1x16x16xf32>
    %26 = vector.shape_cast %25 : vector<1x16x16xf32> to vector<16x16xf32>
    %cst_49 = arith.constant dense<0.000000e+00> : vector<128x16xf32>
    %27 = tpu.matmul %24, %26, %cst_49 {dimension_numbers = #tpu.dot_dimension_numbers<[1], [0], [0], [1], [0, 0, 1, 1], [], []>} : vector<128x16xf32>, vector<16x16xf32>, vector<128x16xf32> -> vector<128x16xf32>
    %28 = arith.addf %22, %27 : vector<128x16xf32>
    %c0_50 = arith.constant 0 : index
    %c1_51 = arith.constant 1 : index
    %c0_52 = arith.constant 0 : index
    %c0_53 = arith.constant 0 : index
    %29 = vector.load %arg7[%c0_50, %c1_51, %c0_52, %c0_53] : memref<2x10x10x16xf32, #tpu.memory_space<vmem>>, vector<2x8x8x16xf32>
    %30 = vector.shape_cast %29 : vector<2x8x8x16xf32> to vector<128x16xf32>
    %c3 = arith.constant 3 : index
    %c0_54 = arith.constant 0 : index
    %c0_55 = arith.constant 0 : index
    %31 = vector.load %arg2[%c3, %c0_54, %c0_55] : memref<9x16x16xf32, #tpu.memory_space<vmem>>, vector<1x16x16xf32>
    %32 = vector.shape_cast %31 : vector<1x16x16xf32> to vector<16x16xf32>
    %cst_56 = arith.constant dense<0.000000e+00> : vector<128x16xf32>
    %33 = tpu.matmul %30, %32, %cst_56 {dimension_numbers = #tpu.dot_dimension_numbers<[1], [0], [0], [1], [0, 0, 1, 1], [], []>} : vector<128x16xf32>, vector<16x16xf32>, vector<128x16xf32> -> vector<128x16xf32>
    %34 = arith.addf %28, %33 : vector<128x16xf32>
    %c0_57 = arith.constant 0 : index
    %c1_58 = arith.constant 1 : index
    %c1_59 = arith.constant 1 : index
    %c0_60 = arith.constant 0 : index
    %35 = vector.load %arg7[%c0_57, %c1_58, %c1_59, %c0_60] : memref<2x10x10x16xf32, #tpu.memory_space<vmem>>, vector<2x8x8x16xf32>
    %36 = vector.shape_cast %35 : vector<2x8x8x16xf32> to vector<128x16xf32>
    %c4 = arith.constant 4 : index
    %c0_61 = arith.constant 0 : index
    %c0_62 = arith.constant 0 : index
    %37 = vector.load %arg2[%c4, %c0_61, %c0_62] : memref<9x16x16xf32, #tpu.memory_space<vmem>>, vector<1x16x16xf32>
    %38 = vector.shape_cast %37 : vector<1x16x16xf32> to vector<16x16xf32>
    %cst_63 = arith.constant dense<0.000000e+00> : vector<128x16xf32>
    %39 = tpu.matmul %36, %38, %cst_63 {dimension_numbers = #tpu.dot_dimension_numbers<[1], [0], [0], [1], [0, 0, 1, 1], [], []>} : vector<128x16xf32>, vector<16x16xf32>, vector<128x16xf32> -> vector<128x16xf32>
    %40 = arith.addf %34, %39 : vector<128x16xf32>
    %c0_64 = arith.constant 0 : index
    %c1_65 = arith.constant 1 : index
    %c2_66 = arith.constant 2 : index
    %c0_67 = arith.constant 0 : index
    %41 = vector.load %arg7[%c0_64, %c1_65, %c2_66, %c0_67] : memref<2x10x10x16xf32, #tpu.memory_space<vmem>>, vector<2x8x8x16xf32>
    %42 = vector.shape_cast %41 : vector<2x8x8x16xf32> to vector<128x16xf32>
    %c5 = arith.constant 5 : index
    %c0_68 = arith.constant 0 : index
    %c0_69 = arith.constant 0 : index
    %43 = vector.load %arg2[%c5, %c0_68, %c0_69] : memref<9x16x16xf32, #tpu.memory_space<vmem>>, vector<1x16x16xf32>
    %44 = vector.shape_cast %43 : vector<1x16x16xf32> to vector<16x16xf32>
    %cst_70 = arith.constant dense<0.000000e+00> : vector<128x16xf32>
    %45 = tpu.matmul %42, %44, %cst_70 {dimension_numbers = #tpu.dot_dimension_numbers<[1], [0], [0], [1], [0, 0, 1, 1], [], []>} : vector<128x16xf32>, vector<16x16xf32>, vector<128x16xf32> -> vector<128x16xf32>
    %46 = arith.addf %40, %45 : vector<128x16xf32>
    %c0_71 = arith.constant 0 : index
    %c2_72 = arith.constant 2 : index
    %c0_73 = arith.constant 0 : index
    %c0_74 = arith.constant 0 : index
    %47 = vector.load %arg7[%c0_71, %c2_72, %c0_73, %c0_74] : memref<2x10x10x16xf32, #tpu.memory_space<vmem>>, vector<2x8x8x16xf32>
    %48 = vector.shape_cast %47 : vector<2x8x8x16xf32> to vector<128x16xf32>
    %c6 = arith.constant 6 : index
    %c0_75 = arith.constant 0 : index
    %c0_76 = arith.constant 0 : index
    %49 = vector.load %arg2[%c6, %c0_75, %c0_76] : memref<9x16x16xf32, #tpu.memory_space<vmem>>, vector<1x16x16xf32>
    %50 = vector.shape_cast %49 : vector<1x16x16xf32> to vector<16x16xf32>
    %cst_77 = arith.constant dense<0.000000e+00> : vector<128x16xf32>
    %51 = tpu.matmul %48, %50, %cst_77 {dimension_numbers = #tpu.dot_dimension_numbers<[1], [0], [0], [1], [0, 0, 1, 1], [], []>} : vector<128x16xf32>, vector<16x16xf32>, vector<128x16xf32> -> vector<128x16xf32>
    %52 = arith.addf %46, %51 : vector<128x16xf32>
    %c0_78 = arith.constant 0 : index
    %c2_79 = arith.constant 2 : index
    %c1_80 = arith.constant 1 : index
    %c0_81 = arith.constant 0 : index
    %53 = vector.load %arg7[%c0_78, %c2_79, %c1_80, %c0_81] : memref<2x10x10x16xf32, #tpu.memory_space<vmem>>, vector<2x8x8x16xf32>
    %54 = vector.shape_cast %53 : vector<2x8x8x16xf32> to vector<128x16xf32>
    %c7 = arith.constant 7 : index
    %c0_82 = arith.constant 0 : index
    %c0_83 = arith.constant 0 : index
    %55 = vector.load %arg2[%c7, %c0_82, %c0_83] : memref<9x16x16xf32, #tpu.memory_space<vmem>>, vector<1x16x16xf32>
    %56 = vector.shape_cast %55 : vector<1x16x16xf32> to vector<16x16xf32>
    %cst_84 = arith.constant dense<0.000000e+00> : vector<128x16xf32>
    %57 = tpu.matmul %54, %56, %cst_84 {dimension_numbers = #tpu.dot_dimension_numbers<[1], [0], [0], [1], [0, 0, 1, 1], [], []>} : vector<128x16xf32>, vector<16x16xf32>, vector<128x16xf32> -> vector<128x16xf32>
    %58 = arith.addf %52, %57 : vector<128x16xf32>
    %c0_85 = arith.constant 0 : index
    %c2_86 = arith.constant 2 : index
    %c2_87 = arith.constant 2 : index
    %c0_88 = arith.constant 0 : index
    %59 = vector.load %arg7[%c0_85, %c2_86, %c2_87, %c0_88] : memref<2x10x10x16xf32, #tpu.memory_space<vmem>>, vector<2x8x8x16xf32>
    %60 = vector.shape_cast %59 : vector<2x8x8x16xf32> to vector<128x16xf32>
    %c8 = arith.constant 8 : index
    %c0_89 = arith.constant 0 : index
    %c0_90 = arith.constant 0 : index
    %61 = vector.load %arg2[%c8, %c0_89, %c0_90] : memref<9x16x16xf32, #tpu.memory_space<vmem>>, vector<1x16x16xf32>
    %62 = vector.shape_cast %61 : vector<1x16x16xf32> to vector<16x16xf32>
    %cst_91 = arith.constant dense<0.000000e+00> : vector<128x16xf32>
    %63 = tpu.matmul %60, %62, %cst_91 {dimension_numbers = #tpu.dot_dimension_numbers<[1], [0], [0], [1], [0, 0, 1, 1], [], []>} : vector<128x16xf32>, vector<16x16xf32>, vector<128x16xf32> -> vector<128x16xf32>
    %64 = arith.addf %58, %63 : vector<128x16xf32>
    %65 = vector.broadcast %6 : vector<1x16xf32> to vector<128x16xf32>
    %66 = arith.addf %64, %65 : vector<128x16xf32>
    %cst_92 = arith.constant 0.000000e+00 : f32
    %67 = vector.broadcast %cst_92 : f32 to vector<128x16xf32>
    %68 = arith.maximumf %66, %67 : vector<128x16xf32>
    %69 = vector.shape_cast %68 : vector<128x16xf32> to vector<2x8x8x16xf32>
    %c0_93 = arith.constant 0 : index
    %c1_94 = arith.constant 1 : index
    %c1_95 = arith.constant 1 : index
    %c0_96 = arith.constant 0 : index
    %70 = vector.load %arg7[%c0_93, %c1_94, %c1_95, %c0_96] : memref<2x10x10x16xf32, #tpu.memory_space<vmem>>, vector<2x8x8x16xf32>
    tpu.vector_store %arg7[%c0_93, %c1_94, %c1_95, %c0_96], %69 {strides = array<i32>} : memref<2x10x10x16xf32, #tpu.memory_space<vmem>>, vector<2x8x8x16xf32>,
    %cst_97 = arith.constant 0.000000e+00 : f32
    %71 = vector.broadcast %cst_97 : f32 to vector<128x16xf32>
    %c0_98 = arith.constant 0 : index
    %c0_99 = arith.constant 0 : index
    %c0_100 = arith.constant 0 : index
    %c0_101 = arith.constant 0 : index
    %72 = vector.load %arg7[%c0_98, %c0_99, %c0_100, %c0_101] : memref<2x10x10x16xf32, #tpu.memory_space<vmem>>, vector<2x8x8x16xf32>
    %73 = vector.shape_cast %72 : vector<2x8x8x16xf32> to vector<128x16xf32>
    %c0_102 = arith.constant 0 : index
    %c0_103 = arith.constant 0 : index
    %c0_104 = arith.constant 0 : index
    %74 = vector.load %arg3[%c0_102, %c0_103, %c0_104] : memref<9x16x16xf32, #tpu.memory_space<vmem>>, vector<1x16x16xf32>
    %75 = vector.shape_cast %74 : vector<1x16x16xf32> to vector<16x16xf32>
    %cst_105 = arith.constant dense<0.000000e+00> : vector<128x16xf32>
    %76 = tpu.matmul %73, %75, %cst_105 {dimension_numbers = #tpu.dot_dimension_numbers<[1], [0], [0], [1], [0, 0, 1, 1], [], []>} : vector<128x16xf32>, vector<16x16xf32>, vector<128x16xf32> -> vector<128x16xf32>
    %77 = arith.addf %71, %76 : vector<128x16xf32>
    %c0_106 = arith.constant 0 : index
    %c0_107 = arith.constant 0 : index
    %c1_108 = arith.constant 1 : index
    %c0_109 = arith.constant 0 : index
    %78 = vector.load %arg7[%c0_106, %c0_107, %c1_108, %c0_109] : memref<2x10x10x16xf32, #tpu.memory_space<vmem>>, vector<2x8x8x16xf32>
    %79 = vector.shape_cast %78 : vector<2x8x8x16xf32> to vector<128x16xf32>
    %c1_110 = arith.constant 1 : index
    %c0_111 = arith.constant 0 : index
    %c0_112 = arith.constant 0 : index
    %80 = vector.load %arg3[%c1_110, %c0_111, %c0_112] : memref<9x16x16xf32, #tpu.memory_space<vmem>>, vector<1x16x16xf32>
    %81 = vector.shape_cast %80 : vector<1x16x16xf32> to vector<16x16xf32>
    %cst_113 = arith.constant dense<0.000000e+00> : vector<128x16xf32>
    %82 = tpu.matmul %79, %81, %cst_113 {dimension_numbers = #tpu.dot_dimension_numbers<[1], [0], [0], [1], [0, 0, 1, 1], [], []>} : vector<128x16xf32>, vector<16x16xf32>, vector<128x16xf32> -> vector<128x16xf32>
    %83 = arith.addf %77, %82 : vector<128x16xf32>
    %c0_114 = arith.constant 0 : index
    %c0_115 = arith.constant 0 : index
    %c2_116 = arith.constant 2 : index
    %c0_117 = arith.constant 0 : index
    %84 = vector.load %arg7[%c0_114, %c0_115, %c2_116, %c0_117] : memref<2x10x10x16xf32, #tpu.memory_space<vmem>>, vector<2x8x8x16xf32>
    %85 = vector.shape_cast %84 : vector<2x8x8x16xf32> to vector<128x16xf32>
    %c2_118 = arith.constant 2 : index
    %c0_119 = arith.constant 0 : index
    %c0_120 = arith.constant 0 : index
    %86 = vector.load %arg3[%c2_118, %c0_119, %c0_120] : memref<9x16x16xf32, #tpu.memory_space<vmem>>, vector<1x16x16xf32>
    %87 = vector.shape_cast %86 : vector<1x16x16xf32> to vector<16x16xf32>
    %cst_121 = arith.constant dense<0.000000e+00> : vector<128x16xf32>
    %88 = tpu.matmul %85, %87, %cst_121 {dimension_numbers = #tpu.dot_dimension_numbers<[1], [0], [0], [1], [0, 0, 1, 1], [], []>} : vector<128x16xf32>, vector<16x16xf32>, vector<128x16xf32> -> vector<128x16xf32>
    %89 = arith.addf %83, %88 : vector<128x16xf32>
    %c0_122 = arith.constant 0 : index
    %c1_123 = arith.constant 1 : index
    %c0_124 = arith.constant 0 : index
    %c0_125 = arith.constant 0 : index
    %90 = vector.load %arg7[%c0_122, %c1_123, %c0_124, %c0_125] : memref<2x10x10x16xf32, #tpu.memory_space<vmem>>, vector<2x8x8x16xf32>
    %91 = vector.shape_cast %90 : vector<2x8x8x16xf32> to vector<128x16xf32>
    %c3_126 = arith.constant 3 : index
    %c0_127 = arith.constant 0 : index
    %c0_128 = arith.constant 0 : index
    %92 = vector.load %arg3[%c3_126, %c0_127, %c0_128] : memref<9x16x16xf32, #tpu.memory_space<vmem>>, vector<1x16x16xf32>
    %93 = vector.shape_cast %92 : vector<1x16x16xf32> to vector<16x16xf32>
    %cst_129 = arith.constant dense<0.000000e+00> : vector<128x16xf32>
    %94 = tpu.matmul %91, %93, %cst_129 {dimension_numbers = #tpu.dot_dimension_numbers<[1], [0], [0], [1], [0, 0, 1, 1], [], []>} : vector<128x16xf32>, vector<16x16xf32>, vector<128x16xf32> -> vector<128x16xf32>
    %95 = arith.addf %89, %94 : vector<128x16xf32>
    %c0_130 = arith.constant 0 : index
    %c1_131 = arith.constant 1 : index
    %c1_132 = arith.constant 1 : index
    %c0_133 = arith.constant 0 : index
    %96 = vector.load %arg7[%c0_130, %c1_131, %c1_132, %c0_133] : memref<2x10x10x16xf32, #tpu.memory_space<vmem>>, vector<2x8x8x16xf32>
    %97 = vector.shape_cast %96 : vector<2x8x8x16xf32> to vector<128x16xf32>
    %c4_134 = arith.constant 4 : index
    %c0_135 = arith.constant 0 : index
    %c0_136 = arith.constant 0 : index
    %98 = vector.load %arg3[%c4_134, %c0_135, %c0_136] : memref<9x16x16xf32, #tpu.memory_space<vmem>>, vector<1x16x16xf32>
    %99 = vector.shape_cast %98 : vector<1x16x16xf32> to vector<16x16xf32>
    %cst_137 = arith.constant dense<0.000000e+00> : vector<128x16xf32>
    %100 = tpu.matmul %97, %99, %cst_137 {dimension_numbers = #tpu.dot_dimension_numbers<[1], [0], [0], [1], [0, 0, 1, 1], [], []>} : vector<128x16xf32>, vector<16x16xf32>, vector<128x16xf32> -> vector<128x16xf32>
    %101 = arith.addf %95, %100 : vector<128x16xf32>
    %c0_138 = arith.constant 0 : index
    %c1_139 = arith.constant 1 : index
    %c2_140 = arith.constant 2 : index
    %c0_141 = arith.constant 0 : index
    %102 = vector.load %arg7[%c0_138, %c1_139, %c2_140, %c0_141] : memref<2x10x10x16xf32, #tpu.memory_space<vmem>>, vector<2x8x8x16xf32>
    %103 = vector.shape_cast %102 : vector<2x8x8x16xf32> to vector<128x16xf32>
    %c5_142 = arith.constant 5 : index
    %c0_143 = arith.constant 0 : index
    %c0_144 = arith.constant 0 : index
    %104 = vector.load %arg3[%c5_142, %c0_143, %c0_144] : memref<9x16x16xf32, #tpu.memory_space<vmem>>, vector<1x16x16xf32>
    %105 = vector.shape_cast %104 : vector<1x16x16xf32> to vector<16x16xf32>
    %cst_145 = arith.constant dense<0.000000e+00> : vector<128x16xf32>
    %106 = tpu.matmul %103, %105, %cst_145 {dimension_numbers = #tpu.dot_dimension_numbers<[1], [0], [0], [1], [0, 0, 1, 1], [], []>} : vector<128x16xf32>, vector<16x16xf32>, vector<128x16xf32> -> vector<128x16xf32>
    %107 = arith.addf %101, %106 : vector<128x16xf32>
    %c0_146 = arith.constant 0 : index
    %c2_147 = arith.constant 2 : index
    %c0_148 = arith.constant 0 : index
    %c0_149 = arith.constant 0 : index
    %108 = vector.load %arg7[%c0_146, %c2_147, %c0_148, %c0_149] : memref<2x10x10x16xf32, #tpu.memory_space<vmem>>, vector<2x8x8x16xf32>
    %109 = vector.shape_cast %108 : vector<2x8x8x16xf32> to vector<128x16xf32>
    %c6_150 = arith.constant 6 : index
    %c0_151 = arith.constant 0 : index
    %c0_152 = arith.constant 0 : index
    %110 = vector.load %arg3[%c6_150, %c0_151, %c0_152] : memref<9x16x16xf32, #tpu.memory_space<vmem>>, vector<1x16x16xf32>
    %111 = vector.shape_cast %110 : vector<1x16x16xf32> to vector<16x16xf32>
    %cst_153 = arith.constant dense<0.000000e+00> : vector<128x16xf32>
    %112 = tpu.matmul %109, %111, %cst_153 {dimension_numbers = #tpu.dot_dimension_numbers<[1], [0], [0], [1], [0, 0, 1, 1], [], []>} : vector<128x16xf32>, vector<16x16xf32>, vector<128x16xf32> -> vector<128x16xf32>
    %113 = arith.addf %107, %112 : vector<128x16xf32>
    %c0_154 = arith.constant 0 : index
    %c2_155 = arith.constant 2 : index
    %c1_156 = arith.constant 1 : index
    %c0_157 = arith.constant 0 : index
    %114 = vector.load %arg7[%c0_154, %c2_155, %c1_156, %c0_157] : memref<2x10x10x16xf32, #tpu.memory_space<vmem>>, vector<2x8x8x16xf32>
    %115 = vector.shape_cast %114 : vector<2x8x8x16xf32> to vector<128x16xf32>
    %c7_158 = arith.constant 7 : index
    %c0_159 = arith.constant 0 : index
    %c0_160 = arith.constant 0 : index
    %116 = vector.load %arg3[%c7_158, %c0_159, %c0_160] : memref<9x16x16xf32, #tpu.memory_space<vmem>>, vector<1x16x16xf32>
    %117 = vector.shape_cast %116 : vector<1x16x16xf32> to vector<16x16xf32>
    %cst_161 = arith.constant dense<0.000000e+00> : vector<128x16xf32>
    %118 = tpu.matmul %115, %117, %cst_161 {dimension_numbers = #tpu.dot_dimension_numbers<[1], [0], [0], [1], [0, 0, 1, 1], [], []>} : vector<128x16xf32>, vector<16x16xf32>, vector<128x16xf32> -> vector<128x16xf32>
    %119 = arith.addf %113, %118 : vector<128x16xf32>
    %c0_162 = arith.constant 0 : index
    %c2_163 = arith.constant 2 : index
    %c2_164 = arith.constant 2 : index
    %c0_165 = arith.constant 0 : index
    %120 = vector.load %arg7[%c0_162, %c2_163, %c2_164, %c0_165] : memref<2x10x10x16xf32, #tpu.memory_space<vmem>>, vector<2x8x8x16xf32>
    %121 = vector.shape_cast %120 : vector<2x8x8x16xf32> to vector<128x16xf32>
    %c8_166 = arith.constant 8 : index
    %c0_167 = arith.constant 0 : index
    %c0_168 = arith.constant 0 : index
    %122 = vector.load %arg3[%c8_166, %c0_167, %c0_168] : memref<9x16x16xf32, #tpu.memory_space<vmem>>, vector<1x16x16xf32>
    %123 = vector.shape_cast %122 : vector<1x16x16xf32> to vector<16x16xf32>
    %cst_169 = arith.constant dense<0.000000e+00> : vector<128x16xf32>
    %124 = tpu.matmul %121, %123, %cst_169 {dimension_numbers = #tpu.dot_dimension_numbers<[1], [0], [0], [1], [0, 0, 1, 1], [], []>} : vector<128x16xf32>, vector<16x16xf32>, vector<128x16xf32> -> vector<128x16xf32>
    %125 = arith.addf %119, %124 : vector<128x16xf32>
    %126 = vector.broadcast %7 : vector<1x16xf32> to vector<128x16xf32>
    %127 = arith.addf %125, %126 : vector<128x16xf32>
    %128 = vector.shape_cast %8 : vector<2x8x8x16xf32> to vector<128x16xf32>
    %129 = arith.addf %127, %128 : vector<128x16xf32>
    %cst_170 = arith.constant 0.000000e+00 : f32
    %130 = vector.broadcast %cst_170 : f32 to vector<128x16xf32>
    %131 = arith.maximumf %129, %130 : vector<128x16xf32>
    %132 = vector.shape_cast %131 : vector<128x16xf32> to vector<2x8x8x16xf32>
    %133 = vector.extract_strided_slice %132 {offsets = [0, 0, 0, 0], sizes = [2, 8, 1, 16], strides = [1, 1, 1, 1]} : vector<2x8x8x16xf32> to vector<2x8x1x16xf32>
    %134 = vector.shape_cast %133 : vector<2x8x1x16xf32> to vector<2x8x16xf32>
    %c0_171 = arith.constant 0 : index
    %c0_172 = arith.constant 0 : index
    %c0_173 = arith.constant 0 : index
    %135 = vector.load %arg6[%c0_171, %c0_172, %c0_173] : memref<2x8x128xf32, #tpu.memory_space<vmem>>, vector<2x8x16xf32>
    tpu.vector_store %arg6[%c0_171, %c0_172, %c0_173], %134 {strides = array<i32>} : memref<2x8x128xf32, #tpu.memory_space<vmem>>, vector<2x8x16xf32>,
    %136 = vector.extract_strided_slice %132 {offsets = [0, 0, 1, 0], sizes = [2, 8, 1, 16], strides = [1, 1, 1, 1]} : vector<2x8x8x16xf32> to vector<2x8x1x16xf32>
    %137 = vector.shape_cast %136 : vector<2x8x1x16xf32> to vector<2x8x16xf32>
    %c0_174 = arith.constant 0 : index
    %c0_175 = arith.constant 0 : index
    %c16 = arith.constant 16 : index
    %138 = vector.load %arg6[%c0_174, %c0_175, %c16] : memref<2x8x128xf32, #tpu.memory_space<vmem>>, vector<2x8x16xf32>
    tpu.vector_store %arg6[%c0_174, %c0_175, %c16], %137 {strides = array<i32>} : memref<2x8x128xf32, #tpu.memory_space<vmem>>, vector<2x8x16xf32>,
    %139 = vector.extract_strided_slice %132 {offsets = [0, 0, 2, 0], sizes = [2, 8, 1, 16], strides = [1, 1, 1, 1]} : vector<2x8x8x16xf32> to vector<2x8x1x16xf32>
    %140 = vector.shape_cast %139 : vector<2x8x1x16xf32> to vector<2x8x16xf32>
    %c0_176 = arith.constant 0 : index
    %c0_177 = arith.constant 0 : index
    %c32 = arith.constant 32 : index
    %141 = vector.load %arg6[%c0_176, %c0_177, %c32] : memref<2x8x128xf32, #tpu.memory_space<vmem>>, vector<2x8x16xf32>
    tpu.vector_store %arg6[%c0_176, %c0_177, %c32], %140 {strides = array<i32>} : memref<2x8x128xf32, #tpu.memory_space<vmem>>, vector<2x8x16xf32>,
    %142 = vector.extract_strided_slice %132 {offsets = [0, 0, 3, 0], sizes = [2, 8, 1, 16], strides = [1, 1, 1, 1]} : vector<2x8x8x16xf32> to vector<2x8x1x16xf32>
    %143 = vector.shape_cast %142 : vector<2x8x1x16xf32> to vector<2x8x16xf32>
    %c0_178 = arith.constant 0 : index
    %c0_179 = arith.constant 0 : index
    %c48 = arith.constant 48 : index
    %144 = vector.load %arg6[%c0_178, %c0_179, %c48] : memref<2x8x128xf32, #tpu.memory_space<vmem>>, vector<2x8x16xf32>
    tpu.vector_store %arg6[%c0_178, %c0_179, %c48], %143 {strides = array<i32>} : memref<2x8x128xf32, #tpu.memory_space<vmem>>, vector<2x8x16xf32>,
    %145 = vector.extract_strided_slice %132 {offsets = [0, 0, 4, 0], sizes = [2, 8, 1, 16], strides = [1, 1, 1, 1]} : vector<2x8x8x16xf32> to vector<2x8x1x16xf32>
    %146 = vector.shape_cast %145 : vector<2x8x1x16xf32> to vector<2x8x16xf32>
    %c0_180 = arith.constant 0 : index
    %c0_181 = arith.constant 0 : index
    %c64 = arith.constant 64 : index
    %147 = vector.load %arg6[%c0_180, %c0_181, %c64] : memref<2x8x128xf32, #tpu.memory_space<vmem>>, vector<2x8x16xf32>
    tpu.vector_store %arg6[%c0_180, %c0_181, %c64], %146 {strides = array<i32>} : memref<2x8x128xf32, #tpu.memory_space<vmem>>, vector<2x8x16xf32>,
    %148 = vector.extract_strided_slice %132 {offsets = [0, 0, 5, 0], sizes = [2, 8, 1, 16], strides = [1, 1, 1, 1]} : vector<2x8x8x16xf32> to vector<2x8x1x16xf32>
    %149 = vector.shape_cast %148 : vector<2x8x1x16xf32> to vector<2x8x16xf32>
    %c0_182 = arith.constant 0 : index
    %c0_183 = arith.constant 0 : index
    %c80 = arith.constant 80 : index
    %150 = vector.load %arg6[%c0_182, %c0_183, %c80] : memref<2x8x128xf32, #tpu.memory_space<vmem>>, vector<2x8x16xf32>
    tpu.vector_store %arg6[%c0_182, %c0_183, %c80], %149 {strides = array<i32>} : memref<2x8x128xf32, #tpu.memory_space<vmem>>, vector<2x8x16xf32>,
    %151 = vector.extract_strided_slice %132 {offsets = [0, 0, 6, 0], sizes = [2, 8, 1, 16], strides = [1, 1, 1, 1]} : vector<2x8x8x16xf32> to vector<2x8x1x16xf32>
    %152 = vector.shape_cast %151 : vector<2x8x1x16xf32> to vector<2x8x16xf32>
    %c0_184 = arith.constant 0 : index
    %c0_185 = arith.constant 0 : index
    %c96 = arith.constant 96 : index
    %153 = vector.load %arg6[%c0_184, %c0_185, %c96] : memref<2x8x128xf32, #tpu.memory_space<vmem>>, vector<2x8x16xf32>
    tpu.vector_store %arg6[%c0_184, %c0_185, %c96], %152 {strides = array<i32>} : memref<2x8x128xf32, #tpu.memory_space<vmem>>, vector<2x8x16xf32>,
    %154 = vector.extract_strided_slice %132 {offsets = [0, 0, 7, 0], sizes = [2, 8, 1, 16], strides = [1, 1, 1, 1]} : vector<2x8x8x16xf32> to vector<2x8x1x16xf32>
    %155 = vector.shape_cast %154 : vector<2x8x1x16xf32> to vector<2x8x16xf32>
    %c0_186 = arith.constant 0 : index
    %c0_187 = arith.constant 0 : index
    %c112 = arith.constant 112 : index
    %156 = vector.load %arg6[%c0_186, %c0_187, %c112] : memref<2x8x128xf32, #tpu.memory_space<vmem>>, vector<2x8x16xf32>
    tpu.vector_store %arg6[%c0_186, %c0_187, %c112], %155 {strides = array<i32>} : memref<2x8x128xf32, #tpu.memory_space<vmem>>, vector<2x8x16xf32>,
    return
  }
  func.func @transform_0(%arg0: i32) -> (i32, i32, i32, i32) {
    %c0_i32 = arith.constant 0 : i32
    %c0_i32_0 = arith.constant 0 : i32
    %c0_i32_1 = arith.constant 0 : i32
    %c0_i32_2 = arith.constant 0 : i32
    return %arg0, %c0_i32, %c0_i32_0, %c0_i32_1 : i32, i32, i32, i32
  }
  func.func @transform_1(%arg0: i32) -> (i32, i32, i32) {
    %c0_i32 = arith.constant 0 : i32
    %c0_i32_0 = arith.constant 0 : i32
    %c0_i32_1 = arith.constant 0 : i32
    %c0_i32_2 = arith.constant 0 : i32
    return %c0_i32, %c0_i32_0, %c0_i32_1 : i32, i32, i32
  }
  func.func @transform_2(%arg0: i32) -> (i32, i32, i32) {
    %c0_i32 = arith.constant 0 : i32
    %c0_i32_0 = arith.constant 0 : i32
    %c0_i32_1 = arith.constant 0 : i32
    %c0_i32_2 = arith.constant 0 : i32
    return %c0_i32, %c0_i32_0, %c0_i32_1 : i32, i32, i32
  }
  func.func @transform_3(%arg0: i32) -> (i32, i32) {
    %c0_i32 = arith.constant 0 : i32
    %c0_i32_0 = arith.constant 0 : i32
    %c0_i32_1 = arith.constant 0 : i32
    return %c0_i32, %c0_i32_0 : i32, i32
  }
  func.func @transform_4(%arg0: i32) -> (i32, i32) {
    %c0_i32 = arith.constant 0 : i32
    %c0_i32_0 = arith.constant 0 : i32
    %c0_i32_1 = arith.constant 0 : i32
    return %c0_i32, %c0_i32_0 : i32, i32
  }
  func.func @transform_5(%arg0: i32) -> (i32, i32, i32) {
    %c0_i32 = arith.constant 0 : i32
    %c0_i32_0 = arith.constant 0 : i32
    %c0_i32_1 = arith.constant 0 : i32
    return %arg0, %c0_i32, %c0_i32_0 : i32, i32, i32
  }
}

</mosaic_0001>

<bundles_post_ra>
// kernel: tpu_custom_call.1
= control target key start
LH: loop header
LB: loop body
LE: loop exit
PB: predicated region body
PF: predicated region fallthrough
CT: control target
= control target key end

     0   :  { %10 = vsyncpa [#allocation4], 0  ;;  %s8173_s0 = inlined_call_operand.hbm [shape: f32[4,8,8,16], index: 0, kind: input, shape index: {}]   ;;  %s8174_s1 = inlined_call_operand.hbm [shape: f32[9,16,16], index: 1, kind: input, shape index: {}]   ;;  %s8175_s2 = inlined_call_operand.hbm [shape: f32[9,16,16], index: 2, kind: input, shape index: {}]   ;;  %s8176_s3 = inlined_call_operand.vmem [shape: f32[1,16], index: 3, kind: input, shape index: {}]   ;;  %s8177_s4 = inlined_call_operand.vmem [shape: f32[1,16], index: 4, kind: input, shape index: {}]   ;;  %s8178_s5 = inlined_call_operand.hbm [shape: f32[4,8,128], index: 5, kind: output, shape index: {}]  }
   0x1   :  { %12 = vsyncpa [#allocation4 + $0x1], 0 }
   0x2   :  { %13 = vsyncpa [#allocation7], 0 }
   0x3   :  { %14 = vsyncpa [#allocation5], 0 }
   0x4   :  { %16 = vsyncpa [#allocation5 + $0x1], 0  ;;  %s6631_s18 = smov 0   ;;  %s6633_s19 = smov 0  }
   0x5   :  { %s6635_s20 = smov 0   ;;  %s6637_s21 = smov 0  }
   0x6 LB: > { %s6652_s22 = sadd.s32 4294967295, %s6583_s21   ;;  %s4880_s23 = sadd.s32 4294967294, %s6583_s21   ;;  %s6583_s21 = sphi %s6637_s21, %s8210_s21   ;;  %s6579_s20 = sphi %s6635_s20, %s8209_s20   ;;  %s6575_s19 = sphi %s6633_s19, %s8208_s19   ;;  %s6571_s18 = sphi %s6631_s18, %s8207_s18  }
   0x7   : > { %p42_p0 = scmp.ne.s32.totalorder %s6575_s19, %s6571_s18  ;;  %p8179_p1 = scmp.eq.s32.totalorder %s6652_s22, 0 }
   0x8   : > { %p156_p3 = scmp.eq.s32.totalorder %s4880_s23, 1  ;;  %p4881_p5 = scmp.ge.s32.totalorder %s6583_s21, 1 }
   0x9   : > { %p6661_p4 = por %p8179_p1, %p42_p0  ;;  %p163_p7 = scmp.lt.s32.totalorder %s6583_s21, 3 }
   0xa   : > { %p6666_p6 = por %p156_p3, %p42_p0  ;;  %s6585_s27 = smov [#allocation6]  }
   0xb   : > { %s8186_s24 = scalar_select %p6661_p4, 1, 0 }
   0xc   : > { %s8187_s25 = scalar_select %p6666_p6, 1, 0 }
   0xd   : > { %p6671_p8 = pnand %p4881_p5, %p163_p7  ;;  %s175_s28 = sshll.u32 %s6585_s27, 4  ;;  %s6675_s28 = int_to_ptr.vmem [resolvable:$true] %s175_s28 }
   0xe   : > { %s6586_s30 = smov [#allocation8]   ;;  %s6427_s9 = scalar_lea.hbm %s8174_s1, 2304 }
   0xf   : > { %p6360_p9 = pneg %p6671_p8  ;;  %s188_s6 = sshll.u32 %s6586_s30, 4  ;;  %s6686_s6 = int_to_ptr.vmem [resolvable:$true] %s188_s6 }
  0x10   : > { %p6428_p12 = scmp.ne.s32.totalorder %s8174_s1, %s6427_s9  ;;  %p6434_p5 = scmp.lt.u32.totalorder %s6427_s9, %s8174_s1 }
  0x11   : > { %p6682_p11 = pnand %p6360_p9, %p8179_p1 }
  0x13   : > { %p6429_p13 = pneg %p6682_p11 }
  0x15   : > { %p6430_p0 = pnand %p6429_p13, %p6428_p12 }
  0x17   : > { %p6431_p3 = pneg %p6430_p0 }
  0x19   : > { %p6436_p7 = pnand %p6434_p5, %p6431_p3 }
  0x1b   : > { %6439 = shalt.err (!%p6436_p7)
}
  0x1c   : > { %s6440_s14 = scalar_lea.vmem %s6675_s28, 2304  ;;  %p6448_p2 = scmp.lt.s32.totalorder %s6675_s28, %s6675_s28 }
  0x1d   : > { %p6441_p9 = scmp.ne.s32.totalorder %s6675_s28, %s6440_s14  ;;  %p6449_p12 = scmp.lt.s32.totalorder %s6440_s14, %s6440_s14 }
  0x1f   : > { %p6443_p10 = pnand %p6441_p9, %p6429_p13  ;;  %p6450_p0 = por %p6449_p12, %p6448_p2 }
  0x21   : > { %p6444_p1 = pneg %p6443_p10 }
  0x23   : > { %p6451_p6 = pnand %p6450_p0, %p6444_p1 }
  0x25   : > { %6454 = shalt.err (!%p6451_p6)
}
  0x26   : > { %s6587_s15 = smov 128   ;;  %s6588_s16 = smov 8  }
  0x27   : > { %6363 = dma.hbm_to_vmem [thread:$0]  (!%p6682_p11), %s8174_s1, 2304, %s6675_s28, [#allocation7], %s6587_s15, %s6587_s15, %s6588_s16  }
  0x28   : > { %s6455_s7 = scalar_lea.hbm %s8175_s2, 2304 }
  0x29   : > { %p6456_p1 = scmp.ne.s32.totalorder %s8175_s2, %s6455_s7  ;;  %p6462_p10 = scmp.lt.u32.totalorder %s6455_s7, %s8175_s2 }
  0x2b   : > { %p6458_p2 = pnand %p6456_p1, %p6429_p13 }
  0x2d   : > { %p6459_p6 = pneg %p6458_p2 }
  0x2f   : > { %p6464_p3 = pnand %p6462_p10, %p6459_p6 }
  0x31   : > { %6467 = shalt.err (!%p6464_p3)
}
  0x32   : > { %s6468_s28 = scalar_lea.vmem %s6686_s6, 2304  ;;  %p6476_p12 = scmp.lt.s32.totalorder %s6686_s6, %s6686_s6 }
  0x33   : > { %p6469_p5 = scmp.ne.s32.totalorder %s6686_s6, %s6468_s28  ;;  %p6477_p0 = scmp.lt.s32.totalorder %s6468_s28, %s6468_s28 }
  0x35   : > { %p6471_p7 = pnand %p6469_p5, %p6429_p13  ;;  %p6478_p1 = por %p6477_p0, %p6476_p12 }
  0x37   : > { %p6472_p9 = pneg %p6471_p7 }
  0x39   : > { %p6479_p2 = pnand %p6478_p1, %p6472_p9 }
  0x3b   : > { %6482 = shalt.err (!%p6479_p2)
}
  0x3c   : > { %6366 = dma.hbm_to_vmem [thread:$0]  (!%p6682_p11), %s8175_s2, 2304, %s6686_s6, [#allocation7], %s6587_s15, %s6587_s15, %s6588_s16  }
  0x3d   : > { %s6747_s29 = sadd.s32 1, %s6583_s21   ;;  %s29_s14 = sadd.s32 1, %s6579_s20 }
  0x3e   : > { %s26_s17 = ssub.s32 %s6583_s21, %s6747_s29  ;;  %p36_p13 = scmp.ne.s32.totalorder %s6579_s20, %s6575_s19 }
  0x3f   : > { %p27_p6 = scmp.eq.s32.totalorder %s26_s17, 0  ;;  %p37_p10 = scmp.eq.s32.totalorder %s6583_s21, 0 }
  0x40   : > { %p8190_p3 = scmp.eq.s32.totalorder %s6652_s22, 1  ;;  %p6377_p7 = scmp.lt.s32.totalorder %s6583_s21, 2 }
  0x41   : > { %s6763_s27 = scalar_select %p27_p6, %s6579_s20, %s29_s14  }
  0x42   : > { %p6757_p5 = por %p8190_p3, %p36_p13  ;;  %p38_p9 = por %p37_p10, %p36_p13 }
  0x43   : > { %s208_s30 = sand.u32 1, %s6579_s20   ;;  %s5190_s6 = sshll.u32 %s6583_s21, 11 }
  0x44   : > { %s8191_s23 = scalar_select %p6757_p5, 1, 0 }
  0x45   : > { %s4885_s7 = sshll.u32 %s208_s30, 7  ;;  %s6770_s10 = scalar_lea.hbm %s8173_s0, %s5190_s6 }
  0x46   : > { %s212_s11 = scalar_lea.vmem [#allocation3], %s4885_s7  ;;  %p6774_p11 = pnand %p6377_p7, %p38_p9 }
  0x47   : > { %s220_s28 = sshll.u32 %s212_s11, 4  ;;  %s6778_s13 = scalar_lea.sflag [#allocation4], %s208_s30  ;;  %s6772_s28 = int_to_ptr.vmem [resolvable:$true] %s220_s28 }
  0x48   : > { %s6483_s14 = scalar_lea.hbm %s6770_s10, 2048  ;;  %p6485_p0 = pneg %p6774_p11 }
  0x49   : > { %p6484_p12 = scmp.ne.s32.totalorder %s6770_s10, %s6483_s14  ;;  %s6488_s6 = scalar_lea.hbm %s8173_s0, 4096 }
  0x4a   : > { %p6489_p13 = scmp.lt.u32.totalorder %s6770_s10, %s8173_s0  ;;  %p6490_p6 = scmp.lt.u32.totalorder %s6488_s6, %s6483_s14 }
  0x4b   : > { %p6486_p1 = pnand %p6485_p0, %p6484_p12  ;;  %p6492_p3 = scmp.lt.u32.totalorder %s6483_s14, %s6770_s10 }
  0x4c   : > { %p6491_p10 = por %p6490_p6, %p6489_p13 }
  0x4d   : > { %p6487_p2 = pneg %p6486_p1 }
  0x4e   : > { %p6493_p7 = por %p6492_p3, %p6491_p10 }
  0x50   : > { %p6494_p9 = pnand %p6493_p7, %p6487_p2 }
  0x52   : > { %6497 = shalt.err (!%p6494_p9)
}
  0x53   : > { %s6498_s30 = scalar_lea.vmem %s6772_s28, 2048  ;;  %s6589_s11 = smov [#allocation3]  }
  0x54   : > { %p6499_p12 = scmp.ne.s32.totalorder %s6772_s28, %s6498_s30  ;;  %s6503_s17 = sshll.u32 %s6589_s11, 4  ;;  %s6504_s17 = int_to_ptr.vmem [resolvable:$false] %s6503_s17 }
  0x55   : > { %s6505_s7 = scalar_lea.vmem %s6504_s17, 4096  ;;  %p6506_p4 = scmp.lt.s32.totalorder %s6772_s28, %s6504_s17 }
  0x56   : > { %p6501_p1 = pnand %p6499_p12, %p6485_p0  ;;  %p6507_p13 = scmp.lt.s32.totalorder %s6505_s7, %s6498_s30 }
  0x58   : > { %p6502_p5 = pneg %p6501_p1  ;;  %p6508_p6 = por %p6507_p13, %p6506_p4 }
  0x5a   : > { %p6509_p10 = pnand %p6508_p6, %p6502_p5 }
  0x5c   : > { %6512 = shalt.err (!%p6509_p10)
}
  0x5d   : > { %6370 = dma.hbm_to_vmem [thread:$0]  (!%p6774_p11), %s6770_s10, 2048, %s6772_s28, %s6778_s13, %s6587_s15, %s6587_s15, %s6588_s16  }
  0x5e   : > { %232 = sbr.rel (%p6671_p8) target bundleno = 1292 (0x50c), region = 40 }
  0x65   : > { %s6812_s14 = sand.u32 1, %s6575_s19   ;;  %p8193_p4 = scmp.ne.s32.totalorder %s8186_s24, 0 }
  0x66   : > { %s4890_s6 = sshll.u32 %s6812_s14, 7  ;;  %s235_s8 = scalar_lea.sflag [#allocation4], %s6812_s14 }
  0x67   : > { %s6816_s9 = scalar_lea.vmem [#allocation3], %s4890_s6 }
  0x68   : > { %6558 = dma.done.wait (%p8193_p4), %s235_s8, 2048  }
  0x69   : > { %6560 = vsyncadd (%p8193_p4), %s235_s8, 4294965248  ;;  %p8194_p5 = scmp.eq.s32.totalorder %s6652_s22, 0 }
  0x6b   : > { %6562 = dma.done.wait (%p8194_p5), [#allocation7], 4608   ;;  %p8195_p8 = pmov %p8194_p5 }
  0x6c   : > { %vm275_vm0 = vcmask 130048   ;;  %vm277_vm1 = vcmask 123904   ;;  %vm286_vm2 = vcmask 122880   ;;  %v6590_v0 = vmov 0.0   ;;  %v397_v1 = vld [vmem:[#allocation6 + $0x10] sm:$0xff]  ;;  %v398_v2 = vld [vmem:[#allocation6 + $0x18] sm:$0xff] }
  0x6d   : > { %6564 = vsyncadd (%p8195_p8), [#allocation7], 4294962688  ;;  %276 = vst.msk [vmem:[#allocation2] sm:$0xff] %vm275_vm0, %v6590_v0  ;;  %v378_v3 = vld [vmem:[#allocation6] sm:$0xff]  ;;  %v6020_v4 = vpack.c.bf16 %v398_v2, %v397_v1  ;;  %v379_v6 = vld [vmem:[#allocation6 + $0x8] sm:$0xff]  ;;  %vm4544_vm3 = vcmask 1047559  }
  0x6e   : > { %278 = vst.msk [vmem:[#allocation2 + $0x8] sm:$0x3] %vm277_vm1, %v6590_v0  ;;  %280 = vst.msk [vmem:[#allocation2 + $0xa8] sm:$0x3] %vm277_vm1, %v6590_v0  ;;  %v6871_v7 = vld [vmem:[%s6816_s9] sm:$0xff]  ;;  %v6024_v8 = vpack.c.bf16 %v379_v6, %v378_v3  ;;  %v6877_v9 = vld [vmem:[%s6816_s9 + $0x8] sm:$0xff] }
  0x6f   : > { %279 = vst.msk [vmem:[#allocation2 + $0xa0] sm:$0xff] %vm275_vm0, %v6590_v0  ;;  %282 = vst.msk [vmem:[#allocation2 + $0x90] sm:$0xff] %vm275_vm0, %v6590_v0  ;;  %v6880_v10 = vld [vmem:[%s6816_s9 + $0x10] sm:$0xff]  ;;  %v6883_v11 = vld [vmem:[%s6816_s9 + $0x18] sm:$0xff]  ;;  %6021 = vmatprep.subr.bf16.mxu0 %v6020_v4  ;;  %vm4541_vm4 = vcmask 1046534   ;;  %vm4538_vm5 = vcmask 1045509  }
  0x70   : > { %283 = vst.msk [vmem:[#allocation2 + $0x98] sm:$0x3] %vm277_vm1, %v6590_v0  ;;  %285 = vst.msk [vmem:[#allocation2 + $0x138] sm:$0x3] %vm277_vm1, %v6590_v0  ;;  %v6893_v12 = vld [vmem:[%s6816_s9 + $0x20] sm:$0xff]  ;;  %v6896_v13 = vld [vmem:[%s6816_s9 + $0x28] sm:$0xff]  ;;  %6023 = vmatpush3.bf16.msra.mxu0 %v6020_v4 }
  0x71   : > { %284 = vst.msk [vmem:[#allocation2 + $0x130] sm:$0xff] %vm275_vm0, %v6590_v0  ;;  %346 = vst.msk [vmem:[#allocation2 + $0x11] sm:$0xff] %vm275_vm0, %v6871_v7  ;;  %v6899_v14 = vld [vmem:[%s6816_s9 + $0x30] sm:$0xff]  ;;  %v6908_v15 = vld [vmem:[%s6816_s9 + $0x40] sm:$0xff]  ;;  %6025 = vmatprep.subr.bf16.mxu0 %v6024_v8  ;;  %vm4535_vm6 = vcmask 1044484   ;;  %vm4526_vm7 = vcmask 1041409  }
  0x72   : > { %288 = vst.msk [vmem:[#allocation2 + $0x10] sm:$0x1] %vm286_vm2, %v6590_v0  ;;  %289 = vst.msk [vmem:[#allocation2 + $0x20] sm:$0x1] %vm286_vm2, %v6590_v0  ;;  %v6911_v16 = vld [vmem:[%s6816_s9 + $0x48] sm:$0xff]  ;;  %v6918_v17 = vld [vmem:[%s6816_s9 + $0x50] sm:$0xff] }
  0x73   : > { %290 = vst.msk [vmem:[#allocation2 + $0x30] sm:$0x1] %vm286_vm2, %v6590_v0  ;;  %291 = vst.msk [vmem:[#allocation2 + $0x40] sm:$0x1] %vm286_vm2, %v6590_v0  ;;  %v6921_v18 = vld [vmem:[%s6816_s9 + $0x58] sm:$0xff]  ;;  %v6924_v19 = vld [vmem:[%s6816_s9 + $0x60] sm:$0xff] }
  0x74   : > { %292 = vst.msk [vmem:[#allocation2 + $0x50] sm:$0x1] %vm286_vm2, %v6590_v0  ;;  %293 = vst.msk [vmem:[#allocation2 + $0x60] sm:$0x1] %vm286_vm2, %v6590_v0  ;;  %v6933_v20 = vld [vmem:[%s6816_s9 + $0x68] sm:$0xff]  ;;  %v6936_v21 = vld [vmem:[%s6816_s9 + $0x70] sm:$0xff] }
  0x75   : > { %294 = vst.msk [vmem:[#allocation2 + $0x70] sm:$0x1] %vm286_vm2, %v6590_v0  ;;  %295 = vst.msk [vmem:[#allocation2 + $0x80] sm:$0x1] %vm286_vm2, %v6590_v0  ;;  %v380_v5 = vld [vmem:[#allocation2 + $0x1] sm:$0xff]  ;;  %v6979_v35 = vld [vmem:[%s6816_s9 + $0x38] sm:$0xff] }
  0x76   : > { %298 = vst.msk [vmem:[#allocation2 + $0xb0] sm:$0x1] %vm286_vm2, %v6590_v0  ;;  %299 = vst.msk [vmem:[#allocation2 + $0xc0] sm:$0x1] %vm286_vm2, %v6590_v0  ;;  %5520 = vmatprep.mubr.msk.f32.mxu0 %vm275_vm0, %v380_v5  ;;  %5772 = vmatprep.mubr.msk.f32.mxu1 %vm275_vm0, %v380_v5  ;;  %v802_v22 = vld [vmem:[#allocation6 + $0x20] sm:$0xff]  ;;  %v803_v23 = vld [vmem:[#allocation6 + $0x28] sm:$0xff] }
  0x77   : > { %300 = vst.msk [vmem:[#allocation2 + $0xd0] sm:$0x1] %vm286_vm2, %v6590_v0  ;;  %301 = vst.msk [vmem:[#allocation2 + $0xe0] sm:$0x1] %vm286_vm2, %v6590_v0  ;;  %v6028_v24 = vpack.c.bf16 %v803_v23, %v802_v22  ;;  %v6968_v32 = vld [vmem:[#allocation2 + $0xa1] sm:$0xff]  ;;  %v6982_v36 = vld [vmem:[%s6816_s9 + $0x78] sm:$0xff] }
  0x78   : > { %302 = vst.msk [vmem:[#allocation2 + $0xf0] sm:$0x1] %vm286_vm2, %v6590_v0  ;;  %303 = vst.msk [vmem:[#allocation2 + $0x100] sm:$0x1] %vm286_vm2, %v6590_v0  ;;  %v6942_v25 = vld [vmem:[#allocation2 + $0x11] sm:$0xff]  ;;  %v1258_v62 = vld [vmem:[#allocation6 + $0x40] sm:$0xff] }
  0x79   : > { %304 = vst.msk [vmem:[#allocation2 + $0x110] sm:$0x1] %vm286_vm2, %v6590_v0  ;;  %305 = vst.msk [vmem:[#allocation2 + $0x120] sm:$0x1] %vm286_vm2, %v6590_v0  ;;  %5521 = vmatmul.mubr.msk.f32.vlgmr.msra.gmra.mrb[0].mxu0 %vm275_vm0, %v6942_v25  ;;  %v1030_v43 = vld [vmem:[#allocation6 + $0x30] sm:$0xff]  ;;  %v1031_v44 = vld [vmem:[#allocation6 + $0x38] sm:$0xff] }
  0x7a   : > { %308 = vst.msk [vmem:[#allocation2 + $0x19] sm:$0x1] %vm286_vm2, %v6590_v0  ;;  %309 = vst.msk [vmem:[#allocation2 + $0x29] sm:$0x1] %vm286_vm2, %v6590_v0  ;;  %6027 = vmatpush3.bf16.msra.mxu0 %v6024_v8  ;;  %v7016_v45 = vld [vmem:[#allocation2 + $0x10] sm:$0xff]  ;;  %v6032_v47 = vpack.c.bf16 %v1031_v44, %v1030_v43  ;;  %v1259_v63 = vld [vmem:[#allocation6 + $0x48] sm:$0xff] }
  0x7b   : > { %310 = vst.msk [vmem:[#allocation2 + $0x39] sm:$0x1] %vm286_vm2, %v6590_v0  ;;  %311 = vst.msk [vmem:[#allocation2 + $0x49] sm:$0x1] %vm286_vm2, %v6590_v0  ;;  %6029 = vmatprep.subr.bf16.mxu0 %v6028_v24  ;;  %v6036_v2 = vpack.c.bf16 %v1259_v63, %v1258_v62  ;;  %vm4532_vm8 = vcmask 1043459   ;;  %vm4529_vm9 = vcmask 1042434  }
  0x7c   : > { %312 = vst.msk [vmem:[#allocation2 + $0x59] sm:$0x1] %vm286_vm2, %v6590_v0  ;;  %313 = vst.msk [vmem:[#allocation2 + $0x69] sm:$0x1] %vm286_vm2, %v6590_v0  ;;  %s6591_s10 = smov 96   ;;  %s6592_s28 = smov 80  }
  0x7d   : > { %314 = vst.msk [vmem:[#allocation2 + $0x79] sm:$0x1] %vm286_vm2, %v6590_v0  ;;  %315 = vst.msk [vmem:[#allocation2 + $0x89] sm:$0x1] %vm286_vm2, %v6590_v0  ;;  %s6593_s12 = smov 64   ;;  %s6594_s13 = smov 48  }
  0x7e   : > { %318 = vst.msk [vmem:[#allocation2 + $0xb9] sm:$0x1] %vm286_vm2, %v6590_v0  ;;  %319 = vst.msk [vmem:[#allocation2 + $0xc9] sm:$0x1] %vm286_vm2, %v6590_v0  ;;  %s6595_s30 = smov 32   ;;  %s6596_s11 = smov 16  }
  0x7f   : > { %320 = vst.msk [vmem:[#allocation2 + $0xd9] sm:$0x1] %vm286_vm2, %v6590_v0  ;;  %321 = vst.msk [vmem:[#allocation2 + $0xe9] sm:$0x1] %vm286_vm2, %v6590_v0  ;;  %s4893_s17 = sshll.u32 %s6812_s14, 4  ;;  %s6597_s7 = smov 112  }
  0x80   : > { %322 = vst.msk [vmem:[#allocation2 + $0xf9] sm:$0x1] %vm286_vm2, %v6590_v0  ;;  %323 = vst.msk [vmem:[#allocation2 + $0x109] sm:$0x1] %vm286_vm2, %v6590_v0  ;;  %s8036_s6 = scalar_lea.vmem [#allocation9], %s4893_s17  ;;  %vm4590_vm10 = vcmask 254080  }
  0x81   : > { %324 = vst.msk [vmem:[#allocation2 + $0x119] sm:$0x1] %vm286_vm2, %v6590_v0  ;;  %325 = vst.msk [vmem:[#allocation2 + $0x129] sm:$0x1] %vm286_vm2, %v6590_v0  ;;  %vm4588_vm11 = vcmask 261249   ;;  %vm4618_vm12 = vcmask 392450  }
  0x82   : > { %287 = vst.msk [vmem:[#allocation2] sm:$0x1] %vm286_vm2, %v6590_v0  ;;  %296 = vst.msk [vmem:[#allocation2 + $0x90] sm:$0x1] %vm286_vm2, %v6590_v0  ;;  %vm4620_vm13 = vcmask 386304   ;;  %vm4648_vm14 = vcmask 523651  }
  0x83   : > { %297 = vst.msk [vmem:[#allocation2 + $0xa0] sm:$0x1] %vm286_vm2, %v6590_v0  ;;  %306 = vst.msk [vmem:[#allocation2 + $0x130] sm:$0x1] %vm286_vm2, %v6590_v0  ;;  %vm4650_vm15 = vcmask 518528   ;;  %vm4680_vm1 = vcmask 650752  }
  0x84   : > { %307 = vst.msk [vmem:[#allocation2 + $0x9] sm:$0x1] %vm286_vm2, %v6590_v0  ;;  %316 = vst.msk [vmem:[#allocation2 + $0x99] sm:$0x1] %vm286_vm2, %v6590_v0  ;;  %s5191_s8 = sshll.u32 %s6652_s22, 8  ;;  %s4788_s9 = sshll.u32 %s8036_s6, 4  ;;  %s8127_s9 = int_to_ptr.vmem [resolvable:$true] %s4788_s9 }
  0x85   : > { %317 = vst.msk [vmem:[#allocation2 + $0xa9] sm:$0x1] %vm286_vm2, %v6590_v0  ;;  %326 = vst.msk [vmem:[#allocation2 + $0x139] sm:$0x1] %vm286_vm2, %v6590_v0  ;;  %v7080_v0 = vld [vmem:[#allocation2 + $0x12] sm:$0xff]  ;;  %vm4708_vm2 = vcmask 786053   ;;  %s8125_s15 = scalar_lea.hbm %s8178_s5, %s5191_s8 }
  0x86   : > { %347 = vst.msk [vmem:[#allocation2 + $0x21] sm:$0xff] %vm275_vm0, %v6877_v9  ;;  %348 = vst.msk [vmem:[#allocation2 + $0x31] sm:$0xff] %vm275_vm0, %v6880_v10  ;;  %s4775_s16 = scalar_lea.sflag [#allocation5], %s6812_s14  ;;  %p8204_p0 = scmp.ne.s32.totalorder %s8191_s23, 0 }
  0x87   : > { %349 = vst.msk [vmem:[#allocation2 + $0x41] sm:$0xff] %vm275_vm0, %v6883_v11  ;;  %350 = vst.msk [vmem:[#allocation2 + $0x51] sm:$0xff] %vm275_vm0, %v6893_v12  ;;  %s6598_s22 = smov [#allocation9]  }
  0x88   : > { %351 = vst.msk [vmem:[#allocation2 + $0x61] sm:$0xff] %vm275_vm0, %v6896_v13  ;;  %352 = vst.msk [vmem:[#allocation2 + $0x71] sm:$0xff] %vm275_vm0, %v6899_v14 }
  0x89   : > { %354 = vst.msk [vmem:[#allocation2 + $0xb1] sm:$0xff] %vm275_vm0, %v6908_v15  ;;  %355 = vst.msk [vmem:[#allocation2 + $0xc1] sm:$0xff] %vm275_vm0, %v6911_v16  ;;  %v7010_v42 = vld [vmem:[#allocation2] sm:$0xff] }
  0x8a   : > { %8196 = vst [vmem:[#allocation13_spill] sm:$0xff] %v6924_v19  ;;  %356 = vst.msk [vmem:[#allocation2 + $0xd1] sm:$0xff] %vm275_vm0, %v6918_v17  ;;  %v7042_v53 = vld [vmem:[#allocation2 + $0xa0] sm:$0xff] }
  0x8b   : > { %357 = vst.msk [vmem:[#allocation2 + $0xe1] sm:$0xff] %vm275_vm0, %v6921_v18  ;;  %358 = vst.msk [vmem:[#allocation2 + $0xf1] sm:$0xff] %vm275_vm0, %v6924_v19  ;;  %v7074_v61 = vld [vmem:[#allocation2 + $0x2] sm:$0xff] }
  0x8c   : > { %8197 = vst [vmem:[#allocation14_spill] sm:$0xff] %v6933_v20  ;;  %8198 = vst [vmem:[#allocation15_spill] sm:$0xff] %v6936_v21  ;;  %v7106_v22 = vld [vmem:[#allocation2 + $0xa2] sm:$0xff] }
  0x8d   : > { %359 = vst.msk [vmem:[#allocation2 + $0x101] sm:$0xff] %vm275_vm0, %v6933_v20  ;;  %360 = vst.msk [vmem:[#allocation2 + $0x111] sm:$0xff] %vm275_vm0, %v6936_v21  ;;  %v6946_v26 = vld [vmem:[#allocation2 + $0x21] sm:$0xff]  ;;  %v6950_v27 = vld [vmem:[#allocation2 + $0x31] sm:$0xff] }
  0x8e   : > { %5523 = vmatprep.mubr.msk.f32.mxu0 %vm275_vm0, %v6946_v26  ;;  %v6952_v28 = vld [vmem:[#allocation2 + $0x41] sm:$0xff]  ;;  %v6958_v29 = vld [vmem:[#allocation2 + $0x51] sm:$0xff]  ;;  %8199 = vst [vmem:[#allocation16_spill] sm:$0xff] %v6982_v36  ;;  %353 = vst.msk [vmem:[#allocation2 + $0x81] sm:$0xff] %vm275_vm0, %v6979_v35 }
  0x8f   : > { %5524 = vmatmul.mubr.msk.f32.gmra.mrb[2].mxu0 %vm275_vm0, %v6950_v27  ;;  %v6960_v30 = vld [vmem:[#allocation2 + $0x61] sm:$0xff]  ;;  %v6966_v31 = vld [vmem:[#allocation2 + $0x71] sm:$0xff]  ;;  %361 = vst.msk [vmem:[#allocation2 + $0x121] sm:$0xff] %vm275_vm0, %v6982_v36 }
  0x90   : > { %5526 = vmatprep.mubr.msk.f32.mxu0 %vm275_vm0, %v6952_v28  ;;  %v6974_v33 = vld [vmem:[#allocation2 + $0xb1] sm:$0xff]  ;;  %v6976_v34 = vld [vmem:[#allocation2 + $0xc1] sm:$0xff] }
  0x91   : > { %v6992_v37 = vld [vmem:[#allocation2 + $0xd1] sm:$0xff]  ;;  %v7018_v46 = vld [vmem:[#allocation2 + $0x20] sm:$0xff] }
  0x92   : > { %v6994_v38 = vld [vmem:[#allocation2 + $0xe1] sm:$0xff]  ;;  %v7000_v39 = vld [vmem:[#allocation2 + $0xf1] sm:$0xff] }
  0x93   : > { %5527 = vmatmul.mubr.msk.f32.gmra.mrb[4].mxu0 %vm275_vm0, %v6958_v29  ;;  %v7024_v48 = vld [vmem:[#allocation2 + $0x30] sm:$0xff]  ;;  %v7026_v49 = vld [vmem:[#allocation2 + $0x40] sm:$0xff]  ;;  %v1487_v36 = vld [vmem:[#allocation6 + $0x58] sm:$0xff] }
  0x94   : > { %5529 = vmatprep.mubr.msk.f32.mxu0 %vm275_vm0, %v6960_v30  ;;  %v7002_v40 = vld [vmem:[#allocation2 + $0x101] sm:$0xff]  ;;  %v7008_v41 = vld [vmem:[#allocation2 + $0x111] sm:$0xff] }
  0x95   : > { %v7032_v50 = vld [vmem:[#allocation2 + $0x50] sm:$0xff]  ;;  %v7034_v51 = vld [vmem:[#allocation2 + $0x60] sm:$0xff] }
  0x96   : > { %v7040_v52 = vld [vmem:[#allocation2 + $0x70] sm:$0xff]  ;;  %v7050_v55 = vld [vmem:[#allocation2 + $0xc0] sm:$0xff] }
  0x97   : > { %5530 = vmatmul.mubr.msk.f32.gmra.mrb[6].mxu0 %vm275_vm0, %v6966_v31  ;;  %v7048_v54 = vld [vmem:[#allocation2 + $0xb0] sm:$0xff]  ;;  %v7058_v57 = vld [vmem:[#allocation2 + $0xe0] sm:$0xff] }
  0x98   : > { %5532 = vmatprep.mubr.msk.f32.mxu0 %vm275_vm0, %v6968_v32  ;;  %v7056_v56 = vld [vmem:[#allocation2 + $0xd0] sm:$0xff]  ;;  %v7066_v59 = vld [vmem:[#allocation2 + $0x100] sm:$0xff] }
  0x99   : > { %v7064_v58 = vld [vmem:[#allocation2 + $0xf0] sm:$0xff]  ;;  %v7082_v1 = vld [vmem:[#allocation2 + $0x22] sm:$0xff] }
  0x9a   : > { %v7072_v60 = vld [vmem:[#allocation2 + $0x110] sm:$0xff]  ;;  %v7090_v4 = vld [vmem:[#allocation2 + $0x42] sm:$0xff] }
  0x9b   : > { %5533 = vmatmul.mubr.msk.f32.gmra.mrb[8].mxu0 %vm275_vm0, %v6974_v33  ;;  %v7088_v3 = vld [vmem:[#allocation2 + $0x32] sm:$0xff]  ;;  %v7098_v6 = vld [vmem:[#allocation2 + $0x62] sm:$0xff] }
  0x9c   : > { %5535 = vmatprep.mubr.msk.f32.mxu0 %vm275_vm0, %v6976_v34  ;;  %v7096_v5 = vld [vmem:[#allocation2 + $0x52] sm:$0xff]  ;;  %v7122_v44 = vld [vmem:[#allocation2 + $0xe2] sm:$0xff] }
  0x9d   : > { %v7104_v8 = vld [vmem:[#allocation2 + $0x72] sm:$0xff]  ;;  %v7130_v62 = vld [vmem:[#allocation2 + $0x102] sm:$0xff] }
  0x9e   : > { %v7112_v23 = vld [vmem:[#allocation2 + $0xb2] sm:$0xff] }
  0x9f   : > { %5536 = vmatmul.mubr.msk.f32.gmra.mrb[10].mxu0 %vm275_vm0, %v6992_v37  ;;  %v7120_v43 = vld [vmem:[#allocation2 + $0xd2] sm:$0xff] }
  0xa0   : > { %5538 = vmatprep.mubr.msk.f32.mxu0 %vm275_vm0, %v6994_v38  ;;  %v7136_v63 = vld [vmem:[#allocation2 + $0x112] sm:$0xff] }
  0xa1   : > { %v1486_v21 = vld [vmem:[#allocation6 + $0x50] sm:$0xff] }
  0xa2   : > { %v6040_v19 = vpack.c.bf16 %v1487_v36, %v1486_v21  ;;  %v7154_v21 = vld [vmem:[#allocation2 + $0x80] sm:$0xff] }
  0xa3   : > { %5539 = vmatmul.mubr.msk.f32.gmra.mrb[12].mxu0 %vm275_vm0, %v7000_v39  ;;  %v7172_v36 = vld [vmem:[#allocation2 + $0x120] sm:$0xff] }
  0xa4   : > { %5541 = vmatprep.mubr.msk.f32.mxu0 %vm275_vm0, %v7002_v40 }
  0xa7   : > { %5542 = vmatmul.mubr.msk.f32.gmra.mrb[14].mxu0 %vm275_vm0, %v7008_v41 }
  0xa8   : > { %5548 = vmatprep.mubr.msk.f32.mxu0 %vm275_vm0, %v7010_v42 }
  0xab   : > { %5549 = vmatmul.mubr.msk.f32.vlgmr.msra.gmra.mrb[0].mxu0 %vm275_vm0, %v7016_v45 }
  0xac   : > { %6031 = vmatpush3.bf16.msra.mxu0 %v6028_v24  ;;  %5551 = vmatprep.mubr.msk.f32.mxu0 %vm275_vm0, %v7018_v46  ;;  %v7114_v24 = vld [vmem:[#allocation2 + $0xc2] sm:$0xff] }
  0xad   : > { %6033 = vmatprep.subr.bf16.mxu0 %v6032_v47 }
  0xaf   : > { %5552 = vmatmul.mubr.msk.f32.gmra.mrb[2].mxu0 %vm275_vm0, %v7024_v48 }
  0xb0   : > { %5554 = vmatprep.mubr.msk.f32.mxu0 %vm275_vm0, %v7026_v49 }
  0xb3   : > { %5555 = vmatmul.mubr.msk.f32.gmra.mrb[4].mxu0 %vm275_vm0, %v7032_v50 }
  0xb4   : > { %5557 = vmatprep.mubr.msk.f32.mxu0 %vm275_vm0, %v7034_v51 }
  0xb7   : > { %5558 = vmatmul.mubr.msk.f32.gmra.mrb[6].mxu0 %vm275_vm0, %v7040_v52 }
  0xb8   : > { %5560 = vmatprep.mubr.msk.f32.mxu0 %vm275_vm0, %v7042_v53 }
  0xbb   : > { %5561 = vmatmul.mubr.msk.f32.gmra.mrb[8].mxu0 %vm275_vm0, %v7048_v54 }
  0xbc   : > { %5563 = vmatprep.mubr.msk.f32.mxu0 %vm275_vm0, %v7050_v55 }
  0xbf   : > { %5564 = vmatmul.mubr.msk.f32.gmra.mrb[10].mxu0 %vm275_vm0, %v7056_v56 }
  0xc0   : > { %5566 = vmatprep.mubr.msk.f32.mxu0 %vm275_vm0, %v7058_v57 }
  0xc3   : > { %5567 = vmatmul.mubr.msk.f32.gmra.mrb[12].mxu0 %vm275_vm0, %v7064_v58 }
  0xc4   : > { %5569 = vmatprep.mubr.msk.f32.mxu0 %vm275_vm0, %v7066_v59 }
  0xc7   : > { %5570 = vmatmul.mubr.msk.f32.gmra.mrb[14].mxu0 %vm275_vm0, %v7072_v60 }
  0xc8   : > { %5576 = vmatprep.mubr.msk.f32.mxu0 %vm275_vm0, %v7074_v61 }
  0xcb   : > { %5577 = vmatmul.mubr.msk.f32.vlgmr.msra.gmra.mrb[0].mxu0 %vm275_vm0, %v7080_v0 }
  0xcc   : > { %6035 = vmatpush3.bf16.msra.mxu0 %v6032_v47  ;;  %5579 = vmatprep.mubr.msk.f32.mxu0 %vm275_vm0, %v7082_v1  ;;  %v7128_v47 = vld [vmem:[#allocation2 + $0xf2] sm:$0xff] }
  0xcd   : > { %6037 = vmatprep.subr.bf16.mxu0 %v6036_v2 }
  0xcf   : > { %5580 = vmatmul.mubr.msk.f32.gmra.mrb[2].mxu0 %vm275_vm0, %v7088_v3 }
  0xd0   : > { %5582 = vmatprep.mubr.msk.f32.mxu0 %vm275_vm0, %v7090_v4 }
  0xd3   : > { %5583 = vmatmul.mubr.msk.f32.gmra.mrb[4].mxu0 %vm275_vm0, %v7096_v5 }
  0xd4   : > { %5585 = vmatprep.mubr.msk.f32.mxu0 %vm275_vm0, %v7098_v6 }
  0xd7   : > { %5586 = vmatmul.mubr.msk.f32.gmra.mrb[6].mxu0 %vm275_vm0, %v7104_v8 }
  0xd8   : > { %5588 = vmatprep.mubr.msk.f32.mxu0 %vm275_vm0, %v7106_v22 }
  0xdb   : > { %5589 = vmatmul.mubr.msk.f32.gmra.mrb[8].mxu0 %vm275_vm0, %v7112_v23 }
  0xdc   : > { %5591 = vmatprep.mubr.msk.f32.mxu0 %vm275_vm0, %v7114_v24 }
  0xdf   : > { %5592 = vmatmul.mubr.msk.f32.gmra.mrb[10].mxu0 %vm275_vm0, %v7120_v43 }
  0xe0   : > { %5594 = vmatprep.mubr.msk.f32.mxu0 %vm275_vm0, %v7122_v44 }
  0xe3   : > { %5595 = vmatmul.mubr.msk.f32.gmra.mrb[12].mxu0 %vm275_vm0, %v7128_v47 }
  0xe4   : > { %5597 = vmatprep.mubr.msk.f32.mxu0 %vm275_vm0, %v7130_v62 }
  0xe7   : > { %5598 = vmatmul.mubr.msk.f32.gmra.mrb[14].mxu0 %vm275_vm0, %v7136_v63 }
  0xe8   : > { %5604 = vmatprep.mubr.msk.f32.mxu0 %vm275_vm0, %v7016_v45  ;;  %v1715_v45 = vld [vmem:[#allocation6 + $0x60] sm:$0xff] }
  0xeb   : > { %5605 = vmatmul.mubr.msk.f32.vlgmr.msra.gmra.mrb[0].mxu0 %vm275_vm0, %v7018_v46 }
  0xec   : > { %6039 = vmatpush3.bf16.msra.mxu0 %v6036_v2  ;;  %5607 = vmatprep.mubr.msk.f32.mxu0 %vm275_vm0, %v7024_v48 }
  0xed   : > { %6041 = vmatprep.subr.bf16.mxu0 %v6040_v19 }
  0xef   : > { %5608 = vmatmul.mubr.msk.f32.gmra.mrb[2].mxu0 %vm275_vm0, %v7026_v49 }
  0xf0   : > { %5610 = vmatprep.mubr.msk.f32.mxu0 %vm275_vm0, %v7032_v50 }
  0xf3   : > { %5611 = vmatmul.mubr.msk.f32.gmra.mrb[4].mxu0 %vm275_vm0, %v7034_v51 }
  0xf4   : > { %5613 = vmatprep.mubr.msk.f32.mxu0 %vm275_vm0, %v7040_v52 }
  0xf7   : > { %5614 = vmatmul.mubr.msk.f32.gmra.mrb[6].mxu0 %vm275_vm0, %v7154_v21 }
  0xf8   : > { %5616 = vmatprep.mubr.msk.f32.mxu0 %vm275_vm0, %v7048_v54  ;;  %v1716_v54 = vld [vmem:[#allocation6 + $0x68] sm:$0xff] }
  0xf9   : > { %v6044_v2 = vpack.c.bf16 %v1716_v54, %v1715_v45  ;;  %v1944_v45 = vld [vmem:[#allocation6 + $0x78] sm:$0xff] }
  0xfb   : > { %5617 = vmatmul.mubr.msk.f32.gmra.mrb[8].mxu0 %vm275_vm0, %v7050_v55 }
  0xfc   : > { %5619 = vmatprep.mubr.msk.f32.mxu0 %vm275_vm0, %v7056_v56 }
  0xff   : > { %5620 = vmatmul.mubr.msk.f32.gmra.mrb[10].mxu0 %vm275_vm0, %v7058_v57 }
 0x100   : > { %5622 = vmatprep.mubr.msk.f32.mxu0 %vm275_vm0, %v7064_v58 }
 0x103   : > { %5623 = vmatmul.mubr.msk.f32.gmra.mrb[12].mxu0 %vm275_vm0, %v7066_v59 }
 0x104   : > { %5625 = vmatprep.mubr.msk.f32.mxu0 %vm275_vm0, %v7072_v60 }
 0x107   : > { %5626 = vmatmul.mubr.msk.f32.gmra.mrb[14].mxu0 %vm275_vm0, %v7172_v36 }
 0x108   : > { %5632 = vmatprep.mubr.msk.f32.mxu0 %vm275_vm0, %v6942_v25  ;;  %v7190_v25 = vld [vmem:[#allocation2 + $0x81] sm:$0xff] }
 0x10b   : > { %5633 = vmatmul.mubr.msk.f32.vlgmr.msra.gmra.mrb[0].mxu0 %vm275_vm0, %v6946_v26 }
 0x10c   : > { %6043 = vmatpush3.bf16.msra.mxu0 %v6040_v19  ;;  %5635 = vmatprep.mubr.msk.f32.mxu0 %vm275_vm0, %v6950_v27  ;;  %v7208_v19 = vld [vmem:[#allocation2 + $0x121] sm:$0xff] }
 0x10d   : > { %6045 = vmatprep.subr.bf16.mxu0 %v6044_v2 }
 0x10f   : > { %5636 = vmatmul.mubr.msk.f32.gmra.mrb[2].mxu0 %vm275_vm0, %v6952_v28 }
 0x110   : > { %5638 = vmatprep.mubr.msk.f32.mxu0 %vm275_vm0, %v6958_v29 }
 0x113   : > { %5639 = vmatmul.mubr.msk.f32.gmra.mrb[4].mxu0 %vm275_vm0, %v6960_v30 }
 0x114   : > { %5641 = vmatprep.mubr.msk.f32.mxu0 %vm275_vm0, %v6966_v31 }
 0x117   : > { %5642 = vmatmul.mubr.msk.f32.gmra.mrb[6].mxu0 %vm275_vm0, %v7190_v25 }
 0x118   : > { %5644 = vmatprep.mubr.msk.f32.mxu0 %vm275_vm0, %v6974_v33  ;;  %v1943_v33 = vld [vmem:[#allocation6 + $0x70] sm:$0xff] }
 0x119   : > { %v6048_v54 = vpack.c.bf16 %v1944_v45, %v1943_v33  ;;  %v2172_v33 = vld [vmem:[#allocation6 + $0x88] sm:$0xff] }
 0x11b   : > { %5645 = vmatmul.mubr.msk.f32.gmra.mrb[8].mxu0 %vm275_vm0, %v6976_v34 }
 0x11c   : > { %5647 = vmatprep.mubr.msk.f32.mxu0 %vm275_vm0, %v6992_v37 }
 0x11f   : > { %5648 = vmatmul.mubr.msk.f32.gmra.mrb[10].mxu0 %vm275_vm0, %v6994_v38 }
 0x120   : > { %5650 = vmatprep.mubr.msk.f32.mxu0 %vm275_vm0, %v7000_v39 }
 0x123   : > { %5651 = vmatmul.mubr.msk.f32.gmra.mrb[12].mxu0 %vm275_vm0, %v7002_v40 }
 0x124   : > { %5653 = vmatprep.mubr.msk.f32.mxu0 %vm275_vm0, %v7008_v41 }
 0x127   : > { %5654 = vmatmul.mubr.msk.f32.gmra.mrb[14].mxu0 %vm275_vm0, %v7208_v19 }
 0x128   : > { %5660 = vmatprep.mubr.msk.f32.mxu0 %vm275_vm0, %v7080_v0  ;;  %v1476_v0 = vld [vmem:[#allocation2 + $0x82] sm:$0xff] }
 0x12b   : > { %5661 = vmatmul.mubr.msk.f32.vlgmr.msra.gmra.mrb[0].mxu0 %vm275_vm0, %v7082_v1 }
 0x12c   : > { %6047 = vmatpush3.bf16.msra.mxu0 %v6044_v2  ;;  %5663 = vmatprep.mubr.msk.f32.mxu0 %vm275_vm0, %v7088_v3  ;;  %v1484_v2 = vld [vmem:[#allocation2 + $0x122] sm:$0xff] }
 0x12d   : > { %6049 = vmatprep.subr.bf16.mxu0 %v6048_v54 }
 0x12f   : > { %5664 = vmatmul.mubr.msk.f32.gmra.mrb[2].mxu0 %vm275_vm0, %v7090_v4 }
 0x130   : > { %5666 = vmatprep.mubr.msk.f32.mxu0 %vm275_vm0, %v7096_v5 }
 0x133   : > { %5667 = vmatmul.mubr.msk.f32.gmra.mrb[4].mxu0 %vm275_vm0, %v7098_v6 }
 0x134   : > { %5669 = vmatprep.mubr.msk.f32.mxu0 %vm275_vm0, %v7104_v8 }
 0x137   : > { %5670 = vmatmul.mubr.msk.f32.gmra.mrb[6].mxu0 %vm275_vm0, %v1476_v0 }
 0x138   : > { %5672 = vmatprep.mubr.msk.f32.mxu0 %vm275_vm0, %v7112_v23  ;;  %v2171_v23 = vld [vmem:[#allocation6 + $0x80] sm:$0xff] }
 0x139   : > { %v6052_v45 = vpack.c.bf16 %v2172_v33, %v2171_v23 }
 0x13b   : > { %5673 = vmatmul.mubr.msk.f32.gmra.mrb[8].mxu0 %vm275_vm0, %v7114_v24 }
 0x13c   : > { %5675 = vmatprep.mubr.msk.f32.mxu0 %vm275_vm0, %v7120_v43 }
 0x13f   : > { %5676 = vmatmul.mubr.msk.f32.gmra.mrb[10].mxu0 %vm275_vm0, %v7122_v44 }
 0x140   : > { %5678 = vmatprep.mubr.msk.f32.mxu0 %vm275_vm0, %v7128_v47 }
 0x143   : > { %5679 = vmatmul.mubr.msk.f32.gmra.mrb[12].mxu0 %vm275_vm0, %v7130_v62 }
 0x144   : > { %5681 = vmatprep.mubr.msk.f32.mxu0 %vm275_vm0, %v7136_v63 }
 0x147   : > { %5682 = vmatmul.mubr.msk.f32.gmra.mrb[14].mxu0 %vm275_vm0, %v1484_v2 }
 0x148   : > { %5688 = vmatprep.mubr.msk.f32.mxu0 %vm275_vm0, %v7018_v46  ;;  %v7256_v46 = vld [vmem:[#allocation2 + $0x90] sm:$0xff] }
 0x14b   : > { %5689 = vmatmul.mubr.msk.f32.vlgmr.msra.gmra.mrb[0].mxu0 %vm275_vm0, %v7024_v48  ;;  %v7274_v48 = vld [vmem:[#allocation2 + $0x130] sm:$0xff] }
 0x14c   : > { %6051 = vmatpush3.bf16.msra.mxu0 %v6048_v54  ;;  %5691 = vmatprep.mubr.msk.f32.mxu0 %vm275_vm0, %v7026_v49 }
 0x14d   : > { %6053 = vmatprep.subr.bf16.mxu0 %v6052_v45 }
 0x14f   : > { %5692 = vmatmul.mubr.msk.f32.gmra.mrb[2].mxu0 %vm275_vm0, %v7032_v50 }
 0x150   : > { %5694 = vmatprep.mubr.msk.f32.mxu0 %vm275_vm0, %v7034_v51 }
 0x153   : > { %5695 = vmatmul.mubr.msk.f32.gmra.mrb[4].mxu0 %vm275_vm0, %v7040_v52 }
 0x154   : > { %5697 = vmatprep.mubr.msk.f32.mxu0 %vm275_vm0, %v7154_v21 }
 0x157   : > { %5698 = vmatmul.mubr.msk.f32.gmra.mrb[6].mxu0 %vm275_vm0, %v7256_v46 }
 0x158   : > { %5700 = vmatprep.mubr.msk.f32.mxu0 %vm275_vm0, %v7050_v55 }
 0x15b   : > { %5701 = vmatmul.mubr.msk.f32.gmra.mrb[8].mxu0 %vm275_vm0, %v7056_v56 }
 0x15c   : > { %5703 = vmatprep.mubr.msk.f32.mxu0 %vm275_vm0, %v7058_v57 }
 0x15f   : > { %5704 = vmatmul.mubr.msk.f32.gmra.mrb[10].mxu0 %vm275_vm0, %v7064_v58 }
 0x160   : > { %5706 = vmatprep.mubr.msk.f32.mxu0 %vm275_vm0, %v7066_v59 }
 0x163   : > { %5707 = vmatmul.mubr.msk.f32.gmra.mrb[12].mxu0 %vm275_vm0, %v7072_v60 }
 0x164   : > { %5709 = vmatprep.mubr.msk.f32.mxu0 %vm275_vm0, %v7172_v36 }
 0x167   : > { %5710 = vmatmul.mubr.msk.f32.gmra.mrb[14].mxu0 %vm275_vm0, %v7274_v48 }
 0x168   : > { %5716 = vmatprep.mubr.msk.f32.mxu0 %vm275_vm0, %v6946_v26  ;;  %v7292_v26 = vld [vmem:[#allocation2 + $0x91] sm:$0xff] }
 0x16b   : > { %5717 = vmatmul.mubr.msk.f32.vlgmr.msra.gmra.mrb[0].mxu0 %vm275_vm0, %v6950_v27  ;;  %v7310_v27 = vld [vmem:[#allocation2 + $0x131] sm:$0xff] }
 0x16c   : > { %6055 = vmatpush3.bf16.msra.mxu0 %v6052_v45  ;;  %5719 = vmatprep.mubr.msk.f32.mxu0 %vm275_vm0, %v6952_v28  ;;  %v7327_v28 = vld [vmem:[#allocation2 + $0x92] sm:$0xff] }
 0x16f   : > { %5720 = vmatmul.mubr.msk.f32.gmra.mrb[2].mxu0 %vm275_vm0, %v6958_v29  ;;  %v7344_v29 = vld [vmem:[#allocation2 + $0x132] sm:$0xff] }
 0x170   : > { %5722 = vmatprep.mubr.msk.f32.mxu0 %vm275_vm0, %v6960_v30  ;;  %v2471_v30 = vld [vmem:[#allocation8 + $0x10] sm:$0xff] }
 0x173   : > { %5723 = vmatmul.mubr.msk.f32.gmra.mrb[4].mxu0 %vm275_vm0, %v6966_v31  ;;  %v2472_v31 = vld [vmem:[#allocation8 + $0x18] sm:$0xff] }
 0x174   : > { %5725 = vmatprep.mubr.msk.f32.mxu0 %vm275_vm0, %v7190_v25 }
 0x177   : > { %5726 = vmatmul.mubr.msk.f32.gmra.mrb[6].mxu0 %vm275_vm0, %v7292_v26 }
 0x178   : > { %5728 = vmatprep.mubr.msk.f32.mxu0 %vm275_vm0, %v6976_v34  ;;  %v6056_v34 = vpack.c.bf16 %v2472_v31, %v2471_v30 }
 0x17a   : > { %6057 = vmatprep.subr.bf16.mxu1 %v6056_v34 }
 0x17b   : > { %5729 = vmatmul.mubr.msk.f32.gmra.mrb[8].mxu0 %vm275_vm0, %v6992_v37  ;;  %6059 = vmatpush3.bf16.msra.mxu1 %v6056_v34  ;;  %v2452_v37 = vld [vmem:[#allocation8] sm:$0xff] }
 0x17c   : > { %5731 = vmatprep.mubr.msk.f32.mxu0 %vm275_vm0, %v6994_v38  ;;  %v2453_v38 = vld [vmem:[#allocation8 + $0x8] sm:$0xff] }
 0x17f   : > { %5732 = vmatmul.mubr.msk.f32.gmra.mrb[10].mxu0 %vm275_vm0, %v7000_v39  ;;  %v6060_v39 = vpack.c.bf16 %v2453_v38, %v2452_v37 }
 0x180   : > { %5734 = vmatprep.mubr.msk.f32.mxu0 %vm275_vm0, %v7002_v40  ;;  %v7351_v40 = vld [vmem:[%s8176_s3] ss:$0 sm:$0xff] }
 0x181   : > { %6061 = vmatprep.subr.bf16.mxu1 %v6060_v39 }
 0x183   : > { %5735 = vmatmul.mubr.msk.f32.gmra.mrb[12].mxu0 %vm275_vm0, %v7008_v41 }
 0x184   : > { %5737 = vmatprep.mubr.msk.f32.mxu0 %vm275_vm0, %v7208_v19 }
 0x187   : > { %5738 = vmatmul.mubr.msk.f32.gmra.mrb[14].mxu0 %vm275_vm0, %v7310_v27 }
 0x188   : > { %5744 = vmatprep.mubr.msk.f32.mxu0 %vm275_vm0, %v7082_v1 }
 0x18b   : > { %5745 = vmatmul.mubr.msk.f32.vlgmr.msra.gmra.mrb[0].mxu0 %vm275_vm0, %v7088_v3 }
 0x18c   : > { %5747 = vmatprep.mubr.msk.f32.mxu0 %vm275_vm0, %v7090_v4 }
 0x18f   : > { %5748 = vmatmul.mubr.msk.f32.gmra.mrb[2].mxu0 %vm275_vm0, %v7096_v5 }
 0x190   : > { %5750 = vmatprep.mubr.msk.f32.mxu0 %vm275_vm0, %v7098_v6  ;;  %v2876_v6 = vld [vmem:[#allocation8 + $0x20] sm:$0xff] }
 0x193   : > { %5751 = vmatmul.mubr.msk.f32.gmra.mrb[4].mxu0 %vm275_vm0, %v7104_v8  ;;  %v2877_v8 = vld [vmem:[#allocation8 + $0x28] sm:$0xff] }
 0x194   : > { %5753 = vmatprep.mubr.msk.f32.mxu0 %vm275_vm0, %v1476_v0 }
 0x197   : > { %5754 = vmatmul.mubr.msk.f32.gmra.mrb[6].mxu0 %vm275_vm0, %v7327_v28 }
 0x198   : > { %5756 = vmatprep.mubr.msk.f32.mxu0 %vm275_vm0, %v7114_v24 }
 0x19b   : > { %5757 = vmatmul.mubr.msk.f32.gmra.mrb[8].mxu0 %vm275_vm0, %v7120_v43 }
 0x19c   : > { %5759 = vmatprep.mubr.msk.f32.mxu0 %vm275_vm0, %v7122_v44 }
 0x19f   : > { %5760 = vmatmul.mubr.msk.f32.gmra.mrb[10].mxu0 %vm275_vm0, %v7128_v47 }
 0x1a0   : > { %5762 = vmatprep.mubr.msk.f32.mxu0 %vm275_vm0, %v7130_v62  ;;  %v7363_v62 = vpack.c.bf16 %v2877_v8, %v2876_v6 }
 0x1a3   : > { %5763 = vmatmul.mubr.msk.f32.gmra.mrb[12].mxu0 %vm275_vm0, %v7136_v63 }
 0x1a4   : > { %5765 = vmatprep.mubr.msk.f32.mxu0 %vm275_vm0, %v1484_v2 }
 0x1a7   : > { %5766 = vmatmul.mubr.msk.f32.gmra.mrb[14].mxu0 %vm275_vm0, %v7344_v29 }
 0x25e   : > { %v5746_v41 = vpop.f32.mrb[0].mxu0 }
 0x25f   : > { %v2389_v49 = vadd.f32 %v5746_v41, %v7351_v40  ;;  %v2287_v50 = vpop.f32.mrb[1].mxu0 }
 0x260   : > { %v2388_v51 = vadd.f32 %v7351_v40, %v2287_v50 }
 0x261   : > { %v2405_v52 = vmax.f32 %v2389_v49, 0.0 }
 0x262   : > { %v2404_v55 = vmax.f32 %v2388_v51, 0.0  ;;  %v5749_v56 = vpop.f32.mrb[2].mxu0 }
 0x263   : > { %2421 = vst.msk [vmem:[#allocation2 + $0x21] sm:$0xff] %vm275_vm0, %v2405_v52  ;;  %v2391_v57 = vadd.f32 %v5749_v56, %v7351_v40  ;;  %v2297_v58 = vpop.f32.mrb[3].mxu0 }
 0x264   : > { %2420 = vst.msk [vmem:[#allocation2 + $0x11] sm:$0xff] %vm275_vm0, %v2404_v55  ;;  %v2390_v59 = vadd.f32 %v7351_v40, %v2297_v58 }
 0x265   : > { %v2407_v60 = vmax.f32 %v2391_v57, 0.0 }
 0x266   : > { %v2406_v1 = vmax.f32 %v2390_v59, 0.0  ;;  %v5752_v3 = vpop.f32.mrb[4].mxu0 }
 0x267   : > { %2423 = vst.msk [vmem:[#allocation2 + $0x41] sm:$0xff] %vm275_vm0, %v2407_v60  ;;  %v2393_v4 = vadd.f32 %v5752_v3, %v7351_v40  ;;  %v2307_v5 = vpop.f32.mrb[5].mxu0 }
 0x268   : > { %2422 = vst.msk [vmem:[#allocation2 + $0x31] sm:$0xff] %vm275_vm0, %v2406_v1  ;;  %v2392_v24 = vadd.f32 %v7351_v40, %v2307_v5 }
 0x269   : > { %v2409_v43 = vmax.f32 %v2393_v4, 0.0 }
 0x26a   : > { %v2408_v44 = vmax.f32 %v2392_v24, 0.0  ;;  %v5755_v47 = vpop.f32.mrb[6].mxu0  ;;  %v7373_v19 = vld [vmem:[#allocation2 + $0x21] sm:$0xff] }
 0x26b   : > { %2425 = vst.msk [vmem:[#allocation2 + $0x61] sm:$0xff] %vm275_vm0, %v2409_v43  ;;  %v2395_v63 = vadd.f32 %v5755_v47, %v7351_v40  ;;  %v2317_v21 = vpop.f32.mrb[7].mxu0  ;;  %v7367_v36 = vld [vmem:[#allocation2 + $0x11] sm:$0xff] }
 0x26c   : > { %2424 = vst.msk [vmem:[#allocation2 + $0x51] sm:$0xff] %vm275_vm0, %v2408_v44  ;;  %v2394_v25 = vadd.f32 %v7351_v40, %v2317_v21  ;;  %5773 = vmatmul.mubr.msk.f32.vlgmr.msra.gmra.mrb[0].mxu1 %vm275_vm0, %v7367_v36 }
 0x26d   : > { %v2411_v54 = vmax.f32 %v2395_v63, 0.0  ;;  %6063 = vmatpush3.bf16.msra.mxu1 %v6060_v39  ;;  %5775 = vmatprep.mubr.msk.f32.mxu1 %vm275_vm0, %v7373_v19 }
 0x26e   : > { %v2410_v0 = vmax.f32 %v2394_v25, 0.0  ;;  %v5758_v2 = vpop.f32.mrb[8].mxu0  ;;  %6065 = vmatprep.subr.bf16.mxu1 %v7363_v62  ;;  %v7386_v31 = vld [vmem:[#allocation2 + $0x41] sm:$0xff] }
 0x26f   : > { %2427 = vst.msk [vmem:[#allocation2 + $0x81] sm:$0xff] %vm275_vm0, %v2411_v54  ;;  %v2397_v23 = vadd.f32 %v5758_v2, %v7351_v40  ;;  %v2327_v33 = vpop.f32.mrb[9].mxu0  ;;  %v7380_v45 = vld [vmem:[#allocation2 + $0x31] sm:$0xff]  ;;  %v3104_v54 = vld [vmem:[#allocation8 + $0x30] sm:$0xff] }
 0x270   : > { %2426 = vst.msk [vmem:[#allocation2 + $0x71] sm:$0xff] %vm275_vm0, %v2410_v0  ;;  %v2396_v30 = vadd.f32 %v7351_v40, %v2327_v33  ;;  %5776 = vmatmul.mubr.msk.f32.gmra.mrb[2].mxu1 %vm275_vm0, %v7380_v45  ;;  %v3105_v0 = vld [vmem:[#allocation8 + $0x38] sm:$0xff]  ;;  %v7452_v33 = vld [vmem:[#allocation2 + $0x20] sm:$0xff] }
 0x271   : > { %v2413_v34 = vmax.f32 %v2397_v23, 0.0  ;;  %5778 = vmatprep.mubr.msk.f32.mxu1 %vm275_vm0, %v7386_v31  ;;  %v6068_v2 = vpack.c.bf16 %v3105_v0, %v3104_v54  ;;  %v7448_v23 = vld [vmem:[#allocation2 + $0x10] sm:$0xff] }
 0x272   : > { %v2412_v37 = vmax.f32 %v2396_v30, 0.0  ;;  %v5761_v38 = vpop.f32.mrb[10].mxu0  ;;  %v7398_v51 = vld [vmem:[#allocation2 + $0x61] sm:$0xff]  ;;  %v7457_v30 = vld [vmem:[#allocation2 + $0x30] sm:$0xff] }
 0x273   : > { %2429 = vst.msk [vmem:[#allocation2 + $0xc1] sm:$0xff] %vm275_vm0, %v2413_v34  ;;  %v2399_v39 = vadd.f32 %v5761_v38, %v7351_v40  ;;  %v2337_v41 = vpop.f32.mrb[11].mxu0  ;;  %v7392_v49 = vld [vmem:[#allocation2 + $0x51] sm:$0xff] }
 0x274   : > { %2428 = vst.msk [vmem:[#allocation2 + $0xb1] sm:$0xff] %vm275_vm0, %v2412_v37  ;;  %v2398_v50 = vadd.f32 %v7351_v40, %v2337_v41  ;;  %5779 = vmatmul.mubr.msk.f32.gmra.mrb[4].mxu1 %vm275_vm0, %v7392_v49  ;;  %v7465_v34 = vld [vmem:[#allocation2 + $0x50] sm:$0xff] }
 0x275   : > { %v2415_v52 = vmax.f32 %v2399_v39, 0.0  ;;  %5781 = vmatprep.mubr.msk.f32.mxu1 %vm275_vm0, %v7398_v51 }
 0x276   : > { %v2414_v55 = vmax.f32 %v2398_v50, 0.0  ;;  %v5764_v56 = vpop.f32.mrb[12].mxu0 }
 0x277   : > { %2431 = vst.msk [vmem:[#allocation2 + $0xe1] sm:$0xff] %vm275_vm0, %v2415_v52  ;;  %v2401_v57 = vadd.f32 %v5764_v56, %v7351_v40  ;;  %v2347_v58 = vpop.f32.mrb[13].mxu0  ;;  %v7404_v59 = vld [vmem:[#allocation2 + $0x71] sm:$0xff] }
 0x278   : > { %2430 = vst.msk [vmem:[#allocation2 + $0xd1] sm:$0xff] %vm275_vm0, %v2414_v55  ;;  %v2400_v60 = vadd.f32 %v7351_v40, %v2347_v58  ;;  %5782 = vmatmul.mubr.msk.f32.gmra.mrb[6].mxu1 %vm275_vm0, %v7404_v59  ;;  %v7473_v37 = vld [vmem:[#allocation2 + $0x70] sm:$0xff] }
 0x279   : > { %v2417_v1 = vmax.f32 %v2401_v57, 0.0  ;;  %5784 = vmatprep.mubr.msk.f32.mxu1 %vm275_vm0, %v6968_v32  ;;  %v3332_v56 = vld [vmem:[#allocation8 + $0x40] sm:$0xff]  ;;  %v3333_v57 = vld [vmem:[#allocation8 + $0x48] sm:$0xff] }
 0x27a   : > { %v2416_v3 = vmax.f32 %v2400_v60, 0.0  ;;  %v5767_v4 = vpop.f32.mrb[14].mxu0  ;;  %v7420_v43 = vld [vmem:[#allocation2 + $0xc1] sm:$0xff]  ;;  %v6072_v58 = vpack.c.bf16 %v3333_v57, %v3332_v56  ;;  %v7509_v60 = vld [vmem:[#allocation2 + $0x12] sm:$0xff] }
 0x27b   : > { %2433 = vst.msk [vmem:[#allocation2 + $0x101] sm:$0xff] %vm275_vm0, %v2417_v1  ;;  %v2403_v5 = vadd.f32 %v5767_v4, %v7351_v40  ;;  %v2357_v6 = vpop.f32.mrb[15].mxu0  ;;  %v7414_v8 = vld [vmem:[#allocation2 + $0xb1] sm:$0xff]  ;;  %v7483_v39 = vld [vmem:[#allocation2 + $0xc0] sm:$0xff]  ;;  %v3561_v57 = vld [vmem:[#allocation8 + $0x58] sm:$0xff] }
 0x27c   : > { %2432 = vst.msk [vmem:[#allocation2 + $0xf1] sm:$0xff] %vm275_vm0, %v2416_v3  ;;  %v2402_v24 = vadd.f32 %v7351_v40, %v2357_v6  ;;  %5785 = vmatmul.mubr.msk.f32.gmra.mrb[8].mxu1 %vm275_vm0, %v7414_v8  ;;  %v7479_v38 = vld [vmem:[#allocation2 + $0xb0] sm:$0xff]  ;;  %v7513_v1 = vld [vmem:[#allocation2 + $0x22] sm:$0xff] }
 0x27d   : > { %v2419_v44 = vmax.f32 %v2403_v5, 0.0  ;;  %5787 = vmatprep.mubr.msk.f32.mxu1 %vm275_vm0, %v7420_v43  ;;  %v7517_v3 = vld [vmem:[#allocation2 + $0x32] sm:$0xff]  ;;  %v7521_v4 = vld [vmem:[#allocation2 + $0x42] sm:$0xff] }
 0x27e   : > { %v2418_v32 = vmax.f32 %v2402_v24, 0.0  ;;  %v7430_v40 = vld [vmem:[#allocation2 + $0xe1] sm:$0xff]  ;;  %v7533_v6 = vld [vmem:[#allocation2 + $0x72] sm:$0xff] }
 0x27f   : > { %2435 = vst.msk [vmem:[#allocation2 + $0x121] sm:$0xff] %vm275_vm0, %v2419_v44  ;;  %v7425_v47 = vld [vmem:[#allocation2 + $0xd1] sm:$0xff]  ;;  %v7491_v50 = vld [vmem:[#allocation2 + $0xe0] sm:$0xff] }
 0x280   : > { %2434 = vst.msk [vmem:[#allocation2 + $0x111] sm:$0xff] %vm275_vm0, %v2418_v32  ;;  %5788 = vmatmul.mubr.msk.f32.gmra.mrb[10].mxu1 %vm275_vm0, %v7425_v47  ;;  %v7487_v41 = vld [vmem:[#allocation2 + $0xd0] sm:$0xff]  ;;  %v7529_v5 = vld [vmem:[#allocation2 + $0x62] sm:$0xff] }
 0x281   : > { %5790 = vmatprep.mubr.msk.f32.mxu1 %vm275_vm0, %v7430_v40  ;;  %v7539_v24 = vld [vmem:[#allocation2 + $0xb2] sm:$0xff]  ;;  %v7543_v44 = vld [vmem:[#allocation2 + $0xc2] sm:$0xff] }
 0x282   : > { %v7438_v21 = vld [vmem:[#allocation2 + $0x101] sm:$0xff]  ;;  %v7547_v32 = vld [vmem:[#allocation2 + $0xd2] sm:$0xff] }
 0x283   : > { %v7434_v63 = vld [vmem:[#allocation2 + $0xf1] sm:$0xff]  ;;  %v7499_v52 = vld [vmem:[#allocation2 + $0x100] sm:$0xff] }
 0x284   : > { %5791 = vmatmul.mubr.msk.f32.gmra.mrb[12].mxu1 %vm275_vm0, %v7434_v63  ;;  %v7551_v54 = vld [vmem:[#allocation2 + $0xe2] sm:$0xff] }
 0x285   : > { %5793 = vmatprep.mubr.msk.f32.mxu1 %vm275_vm0, %v7438_v21  ;;  %v7559_v0 = vld [vmem:[#allocation2 + $0x102] sm:$0xff] }
 0x286   : > { %v3560_v56 = vld [vmem:[#allocation8 + $0x50] sm:$0xff] }
 0x287   : > { %v7442_v25 = vld [vmem:[#allocation2 + $0x111] sm:$0xff]  ;;  %v6076_v20 = vpack.c.bf16 %v3561_v57, %v3560_v56 }
 0x288   : > { %5794 = vmatmul.mubr.msk.f32.gmra.mrb[14].mxu1 %vm275_vm0, %v7442_v25  ;;  %v7503_v55 = vld [vmem:[#allocation2 + $0x110] sm:$0xff]  ;;  %v3789_v56 = vld [vmem:[#allocation8 + $0x68] sm:$0xff] }
 0x289   : > { %5800 = vmatprep.mubr.msk.f32.mxu1 %vm275_vm0, %v7010_v42  ;;  %v7461_v42 = vld [vmem:[#allocation2 + $0x40] sm:$0xff] }
 0x28c   : > { %5801 = vmatmul.mubr.msk.f32.vlgmr.msra.gmra.mrb[0].mxu1 %vm275_vm0, %v7448_v23 }
 0x28d   : > { %6067 = vmatpush3.bf16.msra.mxu1 %v7363_v62  ;;  %5803 = vmatprep.mubr.msk.f32.mxu1 %vm275_vm0, %v7452_v33  ;;  %v7469_v62 = vld [vmem:[#allocation2 + $0x60] sm:$0xff] }
 0x28e   : > { %6069 = vmatprep.subr.bf16.mxu1 %v6068_v2 }
 0x290   : > { %5804 = vmatmul.mubr.msk.f32.gmra.mrb[2].mxu1 %vm275_vm0, %v7457_v30 }
 0x291   : > { %5806 = vmatprep.mubr.msk.f32.mxu1 %vm275_vm0, %v7461_v42 }
 0x294   : > { %5807 = vmatmul.mubr.msk.f32.gmra.mrb[4].mxu1 %vm275_vm0, %v7465_v34 }
 0x295   : > { %5809 = vmatprep.mubr.msk.f32.mxu1 %vm275_vm0, %v7469_v62 }
 0x298   : > { %5810 = vmatmul.mubr.msk.f32.gmra.mrb[6].mxu1 %vm275_vm0, %v7473_v37 }
 0x299   : > { %5812 = vmatprep.mubr.msk.f32.mxu1 %vm275_vm0, %v7042_v53  ;;  %v7495_v53 = vld [vmem:[#allocation2 + $0xf0] sm:$0xff] }
 0x29c   : > { %5813 = vmatmul.mubr.msk.f32.gmra.mrb[8].mxu1 %vm275_vm0, %v7479_v38 }
 0x29d   : > { %5815 = vmatprep.mubr.msk.f32.mxu1 %vm275_vm0, %v7483_v39 }
 0x2a0   : > { %5816 = vmatmul.mubr.msk.f32.gmra.mrb[10].mxu1 %vm275_vm0, %v7487_v41 }
 0x2a1   : > { %5818 = vmatprep.mubr.msk.f32.mxu1 %vm275_vm0, %v7491_v50 }
 0x2a4   : > { %5819 = vmatmul.mubr.msk.f32.gmra.mrb[12].mxu1 %vm275_vm0, %v7495_v53 }
 0x2a5   : > { %5821 = vmatprep.mubr.msk.f32.mxu1 %vm275_vm0, %v7499_v52 }
 0x2a8   : > { %5822 = vmatmul.mubr.msk.f32.gmra.mrb[14].mxu1 %vm275_vm0, %v7503_v55 }
 0x2a9   : > { %5828 = vmatprep.mubr.msk.f32.mxu1 %vm275_vm0, %v7074_v61  ;;  %v7525_v61 = vld [vmem:[#allocation2 + $0x52] sm:$0xff] }
 0x2ac   : > { %5829 = vmatmul.mubr.msk.f32.vlgmr.msra.gmra.mrb[0].mxu1 %vm275_vm0, %v7509_v60 }
 0x2ad   : > { %6071 = vmatpush3.bf16.msra.mxu1 %v6068_v2  ;;  %5831 = vmatprep.mubr.msk.f32.mxu1 %vm275_vm0, %v7513_v1  ;;  %v7563_v2 = vld [vmem:[#allocation2 + $0x112] sm:$0xff] }
 0x2ae   : > { %6073 = vmatprep.subr.bf16.mxu1 %v6072_v58 }
 0x2b0   : > { %5832 = vmatmul.mubr.msk.f32.gmra.mrb[2].mxu1 %vm275_vm0, %v7517_v3 }
 0x2b1   : > { %5834 = vmatprep.mubr.msk.f32.mxu1 %vm275_vm0, %v7521_v4 }
 0x2b4   : > { %5835 = vmatmul.mubr.msk.f32.gmra.mrb[4].mxu1 %vm275_vm0, %v7525_v61 }
 0x2b5   : > { %5837 = vmatprep.mubr.msk.f32.mxu1 %vm275_vm0, %v7529_v5 }
 0x2b8   : > { %5838 = vmatmul.mubr.msk.f32.gmra.mrb[6].mxu1 %vm275_vm0, %v7533_v6 }
 0x2b9   : > { %5840 = vmatprep.mubr.msk.f32.mxu1 %vm275_vm0, %v7106_v22  ;;  %v7555_v22 = vld [vmem:[#allocation2 + $0xf2] sm:$0xff] }
 0x2bc   : > { %5841 = vmatmul.mubr.msk.f32.gmra.mrb[8].mxu1 %vm275_vm0, %v7539_v24 }
 0x2bd   : > { %5843 = vmatprep.mubr.msk.f32.mxu1 %vm275_vm0, %v7543_v44 }
 0x2c0   : > { %5844 = vmatmul.mubr.msk.f32.gmra.mrb[10].mxu1 %vm275_vm0, %v7547_v32 }
 0x2c1   : > { %5846 = vmatprep.mubr.msk.f32.mxu1 %vm275_vm0, %v7551_v54 }
 0x2c4   : > { %5847 = vmatmul.mubr.msk.f32.gmra.mrb[12].mxu1 %vm275_vm0, %v7555_v22 }
 0x2c5   : > { %5849 = vmatprep.mubr.msk.f32.mxu1 %vm275_vm0, %v7559_v0 }
 0x2c8   : > { %5850 = vmatmul.mubr.msk.f32.gmra.mrb[14].mxu1 %vm275_vm0, %v7563_v2 }
 0x2c9   : > { %5856 = vmatprep.mubr.msk.f32.mxu1 %vm275_vm0, %v7448_v23  ;;  %v7581_v23 = vld [vmem:[#allocation2 + $0x80] sm:$0xff] }
 0x2cc   : > { %5857 = vmatmul.mubr.msk.f32.vlgmr.msra.gmra.mrb[0].mxu1 %vm275_vm0, %v7452_v33 }
 0x2cd   : > { %6075 = vmatpush3.bf16.msra.mxu1 %v6072_v58  ;;  %5859 = vmatprep.mubr.msk.f32.mxu1 %vm275_vm0, %v7457_v30  ;;  %v7599_v58 = vld [vmem:[#allocation2 + $0x120] sm:$0xff] }
 0x2ce   : > { %6077 = vmatprep.subr.bf16.mxu1 %v6076_v20 }
 0x2d0   : > { %5860 = vmatmul.mubr.msk.f32.gmra.mrb[2].mxu1 %vm275_vm0, %v7461_v42 }
 0x2d1   : > { %5862 = vmatprep.mubr.msk.f32.mxu1 %vm275_vm0, %v7465_v34 }
 0x2d4   : > { %5863 = vmatmul.mubr.msk.f32.gmra.mrb[4].mxu1 %vm275_vm0, %v7469_v62 }
 0x2d5   : > { %5865 = vmatprep.mubr.msk.f32.mxu1 %vm275_vm0, %v7473_v37 }
 0x2d8   : > { %5866 = vmatmul.mubr.msk.f32.gmra.mrb[6].mxu1 %vm275_vm0, %v7581_v23 }
 0x2d9   : > { %5868 = vmatprep.mubr.msk.f32.mxu1 %vm275_vm0, %v7479_v38  ;;  %v3788_v38 = vld [vmem:[#allocation8 + $0x60] sm:$0xff] }
 0x2da   : > { %v6080_v57 = vpack.c.bf16 %v3789_v56, %v3788_v38  ;;  %v4017_v38 = vld [vmem:[#allocation8 + $0x78] sm:$0xff] }
 0x2dc   : > { %5869 = vmatmul.mubr.msk.f32.gmra.mrb[8].mxu1 %vm275_vm0, %v7483_v39 }
 0x2dd   : > { %5871 = vmatprep.mubr.msk.f32.mxu1 %vm275_vm0, %v7487_v41 }
 0x2e0   : > { %5872 = vmatmul.mubr.msk.f32.gmra.mrb[10].mxu1 %vm275_vm0, %v7491_v50 }
 0x2e1   : > { %5874 = vmatprep.mubr.msk.f32.mxu1 %vm275_vm0, %v7495_v53 }
 0x2e4   : > { %5875 = vmatmul.mubr.msk.f32.gmra.mrb[12].mxu1 %vm275_vm0, %v7499_v52 }
 0x2e5   : > { %5877 = vmatprep.mubr.msk.f32.mxu1 %vm275_vm0, %v7503_v55 }
 0x2e8   : > { %5878 = vmatmul.mubr.msk.f32.gmra.mrb[14].mxu1 %vm275_vm0, %v7599_v58 }
 0x2e9   : > { %5884 = vmatprep.mubr.msk.f32.mxu1 %vm275_vm0, %v7367_v36  ;;  %v3322_v36 = vld [vmem:[#allocation2 + $0x81] sm:$0xff] }
 0x2ec   : > { %5885 = vmatmul.mubr.msk.f32.vlgmr.msra.gmra.mrb[0].mxu1 %vm275_vm0, %v7373_v19 }
 0x2ed   : > { %6079 = vmatpush3.bf16.msra.mxu1 %v6076_v20  ;;  %5887 = vmatprep.mubr.msk.f32.mxu1 %vm275_vm0, %v7380_v45  ;;  %v3330_v20 = vld [vmem:[#allocation2 + $0x121] sm:$0xff] }
 0x2ee   : > { %6081 = vmatprep.subr.bf16.mxu1 %v6080_v57 }
 0x2f0   : > { %5888 = vmatmul.mubr.msk.f32.gmra.mrb[2].mxu1 %vm275_vm0, %v7386_v31 }
 0x2f1   : > { %5890 = vmatprep.mubr.msk.f32.mxu1 %vm275_vm0, %v7392_v49 }
 0x2f4   : > { %5891 = vmatmul.mubr.msk.f32.gmra.mrb[4].mxu1 %vm275_vm0, %v7398_v51 }
 0x2f5   : > { %5893 = vmatprep.mubr.msk.f32.mxu1 %vm275_vm0, %v7404_v59 }
 0x2f8   : > { %5894 = vmatmul.mubr.msk.f32.gmra.mrb[6].mxu1 %vm275_vm0, %v3322_v36 }
 0x2f9   : > { %5896 = vmatprep.mubr.msk.f32.mxu1 %vm275_vm0, %v7414_v8  ;;  %v4016_v8 = vld [vmem:[#allocation8 + $0x70] sm:$0xff] }
 0x2fa   : > { %v6084_v56 = vpack.c.bf16 %v4017_v38, %v4016_v8  ;;  %v4245_v8 = vld [vmem:[#allocation8 + $0x88] sm:$0xff] }
 0x2fc   : > { %5897 = vmatmul.mubr.msk.f32.gmra.mrb[8].mxu1 %vm275_vm0, %v7420_v43 }
 0x2fd   : > { %5899 = vmatprep.mubr.msk.f32.mxu1 %vm275_vm0, %v7425_v47 }
 0x300   : > { %5900 = vmatmul.mubr.msk.f32.gmra.mrb[10].mxu1 %vm275_vm0, %v7430_v40 }
 0x301   : > { %5902 = vmatprep.mubr.msk.f32.mxu1 %vm275_vm0, %v7434_v63 }
 0x304   : > { %5903 = vmatmul.mubr.msk.f32.gmra.mrb[12].mxu1 %vm275_vm0, %v7438_v21 }
 0x305   : > { %5905 = vmatprep.mubr.msk.f32.mxu1 %vm275_vm0, %v7442_v25 }
 0x308   : > { %5906 = vmatmul.mubr.msk.f32.gmra.mrb[14].mxu1 %vm275_vm0, %v3330_v20 }
 0x309   : > { %5912 = vmatprep.mubr.msk.f32.mxu1 %vm275_vm0, %v7509_v60  ;;  %v3550_v60 = vld [vmem:[#allocation2 + $0x82] sm:$0xff] }
 0x30c   : > { %5913 = vmatmul.mubr.msk.f32.vlgmr.msra.gmra.mrb[0].mxu1 %vm275_vm0, %v7513_v1 }
 0x30d   : > { %6083 = vmatpush3.bf16.msra.mxu1 %v6080_v57  ;;  %5915 = vmatprep.mubr.msk.f32.mxu1 %vm275_vm0, %v7517_v3  ;;  %v3558_v57 = vld [vmem:[#allocation2 + $0x122] sm:$0xff] }
 0x30e   : > { %6085 = vmatprep.subr.bf16.mxu1 %v6084_v56 }
 0x310   : > { %5916 = vmatmul.mubr.msk.f32.gmra.mrb[2].mxu1 %vm275_vm0, %v7521_v4 }
 0x311   : > { %5918 = vmatprep.mubr.msk.f32.mxu1 %vm275_vm0, %v7525_v61 }
 0x314   : > { %5919 = vmatmul.mubr.msk.f32.gmra.mrb[4].mxu1 %vm275_vm0, %v7529_v5 }
 0x315   : > { %5921 = vmatprep.mubr.msk.f32.mxu1 %vm275_vm0, %v7533_v6 }
 0x318   : > { %5922 = vmatmul.mubr.msk.f32.gmra.mrb[6].mxu1 %vm275_vm0, %v3550_v60 }
 0x319   : > { %5924 = vmatprep.mubr.msk.f32.mxu1 %vm275_vm0, %v7539_v24  ;;  %v4244_v24 = vld [vmem:[#allocation8 + $0x80] sm:$0xff] }
 0x31a   : > { %v6088_v38 = vpack.c.bf16 %v4245_v8, %v4244_v24 }
 0x31c   : > { %5925 = vmatmul.mubr.msk.f32.gmra.mrb[8].mxu1 %vm275_vm0, %v7543_v44 }
 0x31d   : > { %5927 = vmatprep.mubr.msk.f32.mxu1 %vm275_vm0, %v7547_v32 }
 0x320   : > { %5928 = vmatmul.mubr.msk.f32.gmra.mrb[10].mxu1 %vm275_vm0, %v7551_v54 }
 0x321   : > { %5930 = vmatprep.mubr.msk.f32.mxu1 %vm275_vm0, %v7555_v22 }
 0x324   : > { %5931 = vmatmul.mubr.msk.f32.gmra.mrb[12].mxu1 %vm275_vm0, %v7559_v0 }
 0x325   : > { %5933 = vmatprep.mubr.msk.f32.mxu1 %vm275_vm0, %v7563_v2 }
 0x328   : > { %5934 = vmatmul.mubr.msk.f32.gmra.mrb[14].mxu1 %vm275_vm0, %v3558_v57 }
 0x329   : > { %5940 = vmatprep.mubr.msk.f32.mxu1 %vm275_vm0, %v7452_v33 }
 0x32c   : > { %5941 = vmatmul.mubr.msk.f32.vlgmr.msra.gmra.mrb[0].mxu1 %vm275_vm0, %v7457_v30 }
 0x32d   : > { %6087 = vmatpush3.bf16.msra.mxu1 %v6084_v56  ;;  %5943 = vmatprep.mubr.msk.f32.mxu1 %vm275_vm0, %v7461_v42 }
 0x32e   : > { %6089 = vmatprep.subr.bf16.mxu1 %v6088_v38 }
 0x330   : > { %5944 = vmatmul.mubr.msk.f32.gmra.mrb[2].mxu1 %vm275_vm0, %v7465_v34 }
 0x331   : > { %5946 = vmatprep.mubr.msk.f32.mxu1 %vm275_vm0, %v7469_v62 }
 0x334   : > { %5947 = vmatmul.mubr.msk.f32.gmra.mrb[4].mxu1 %vm275_vm0, %v7473_v37 }
 0x335   : > { %5949 = vmatprep.mubr.msk.f32.mxu1 %vm275_vm0, %v7581_v23 }
 0x338   : > { %5950 = vmatmul.mubr.msk.f32.gmra.mrb[6].mxu1 %vm275_vm0, %v7256_v46  ;;  %v7758_v46 = vld [vmem:[%s8177_s4] ss:$0 sm:$0xff] }
 0x339   : > { %5952 = vmatprep.mubr.msk.f32.mxu1 %vm275_vm0, %v7483_v39 }
 0x33c   : > { %5953 = vmatmul.mubr.msk.f32.gmra.mrb[8].mxu1 %vm275_vm0, %v7487_v41 }
 0x33d   : > { %5955 = vmatprep.mubr.msk.f32.mxu1 %vm275_vm0, %v7491_v50 }
 0x340   : > { %5956 = vmatmul.mubr.msk.f32.gmra.mrb[10].mxu1 %vm275_vm0, %v7495_v53 }
 0x341   : > { %5958 = vmatprep.mubr.msk.f32.mxu1 %vm275_vm0, %v7499_v52 }
 0x344   : > { %5959 = vmatmul.mubr.msk.f32.gmra.mrb[12].mxu1 %vm275_vm0, %v7503_v55 }
 0x345   : > { %5961 = vmatprep.mubr.msk.f32.mxu1 %vm275_vm0, %v7599_v58 }
 0x348   : > { %5962 = vmatmul.mubr.msk.f32.gmra.mrb[14].mxu1 %vm275_vm0, %v7274_v48 }
 0x349   : > { %5968 = vmatprep.mubr.msk.f32.mxu1 %vm275_vm0, %v7373_v19 }
 0x34c   : > { %5969 = vmatmul.mubr.msk.f32.vlgmr.msra.gmra.mrb[0].mxu1 %vm275_vm0, %v7380_v45 }
 0x34d   : > { %6091 = vmatpush3.bf16.msra.mxu1 %v6088_v38  ;;  %5971 = vmatprep.mubr.msk.f32.mxu1 %vm275_vm0, %v7386_v31 }
 0x350   : > { %5972 = vmatmul.mubr.msk.f32.gmra.mrb[2].mxu1 %vm275_vm0, %v7392_v49 }
 0x351   : > { %5974 = vmatprep.mubr.msk.f32.mxu1 %vm275_vm0, %v7398_v51 }
 0x354   : > { %5975 = vmatmul.mubr.msk.f32.gmra.mrb[4].mxu1 %vm275_vm0, %v7404_v59 }
 0x355   : > { %5977 = vmatprep.mubr.msk.f32.mxu1 %vm275_vm0, %v3322_v36 }
 0x358   : > { %5978 = vmatmul.mubr.msk.f32.gmra.mrb[6].mxu1 %vm275_vm0, %v7292_v26 }
 0x359   : > { %5980 = vmatprep.mubr.msk.f32.mxu1 %vm275_vm0, %v7420_v43 }
 0x35c   : > { %5981 = vmatmul.mubr.msk.f32.gmra.mrb[8].mxu1 %vm275_vm0, %v7425_v47 }
 0x35d   : > { %5983 = vmatprep.mubr.msk.f32.mxu1 %vm275_vm0, %v7430_v40 }
 0x360   : > { %5984 = vmatmul.mubr.msk.f32.gmra.mrb[10].mxu1 %vm275_vm0, %v7434_v63 }
 0x361   : > { %5986 = vmatprep.mubr.msk.f32.mxu1 %vm275_vm0, %v7438_v21 }
 0x364   : > { %5987 = vmatmul.mubr.msk.f32.gmra.mrb[12].mxu1 %vm275_vm0, %v7442_v25 }
 0x365   : > { %5989 = vmatprep.mubr.msk.f32.mxu1 %vm275_vm0, %v3330_v20 }
 0x368   : > { %5990 = vmatmul.mubr.msk.f32.gmra.mrb[14].mxu1 %vm275_vm0, %v7310_v27 }
 0x369   : > { %5996 = vmatprep.mubr.msk.f32.mxu1 %vm275_vm0, %v7513_v1 }
 0x36c   : > { %5997 = vmatmul.mubr.msk.f32.vlgmr.msra.gmra.mrb[0].mxu1 %vm275_vm0, %v7517_v3 }
 0x36d   : > { %5999 = vmatprep.mubr.msk.f32.mxu1 %vm275_vm0, %v7521_v4 }
 0x370   : > { %6000 = vmatmul.mubr.msk.f32.gmra.mrb[2].mxu1 %vm275_vm0, %v7525_v61 }
 0x371   : > { %6002 = vmatprep.mubr.msk.f32.mxu1 %vm275_vm0, %v7529_v5 }
 0x374   : > { %6003 = vmatmul.mubr.msk.f32.gmra.mrb[4].mxu1 %vm275_vm0, %v7533_v6 }
 0x375   : > { %6005 = vmatprep.mubr.msk.f32.mxu1 %vm275_vm0, %v3550_v60 }
 0x378   : > { %6006 = vmatmul.mubr.msk.f32.gmra.mrb[6].mxu1 %vm275_vm0, %v7327_v28 }
 0x379   : > { %6008 = vmatprep.mubr.msk.f32.mxu1 %vm275_vm0, %v7543_v44 }
 0x37c   : > { %6009 = vmatmul.mubr.msk.f32.gmra.mrb[8].mxu1 %vm275_vm0, %v7547_v32 }
 0x37d   : > { %6011 = vmatprep.mubr.msk.f32.mxu1 %vm275_vm0, %v7551_v54 }
 0x380   : > { %6012 = vmatmul.mubr.msk.f32.gmra.mrb[10].mxu1 %vm275_vm0, %v7555_v22 }
 0x381   : > { %6014 = vmatprep.mubr.msk.f32.mxu1 %vm275_vm0, %v7559_v0 }
 0x384   : > { %6015 = vmatmul.mubr.msk.f32.gmra.mrb[12].mxu1 %vm275_vm0, %v7563_v2 }
 0x385   : > { %6017 = vmatprep.mubr.msk.f32.mxu1 %vm275_vm0, %v3558_v57 }
 0x388   : > { %6018 = vmatmul.mubr.msk.f32.gmra.mrb[14].mxu1 %vm275_vm0, %v7344_v29 }
 0x43f   : > { %v5998_v48 = vpop.f32.mrb[0].mxu1 }
 0x440   : > { %v4462_v26 = vadd.f32 %v5998_v48, %v7758_v46  ;;  %v4360_v27 = vpop.f32.mrb[1].mxu1 }
 0x441   : > { %v4461_v28 = vadd.f32 %v7758_v46, %v4360_v27 }
 0x442   : > { %v4478_v19 = vadd.f32 %v4462_v26, %v6877_v9 }
 0x443   : > { %v4477_v45 = vadd.f32 %v4461_v28, %v6871_v7  ;;  %v6001_v31 = vpop.f32.mrb[2].mxu1 }
 0x444   : > { %v4494_v49 = vmax.f32 %v4478_v19, 0.0  ;;  %v4464_v51 = vadd.f32 %v6001_v31, %v7758_v46  ;;  %v4370_v29 = vpop.f32.mrb[3].mxu1 }
 0x445   : > { %v7765_v59 = vmax.f32 %v4477_v45, 0.0  ;;  %v4463_v43 = vadd.f32 %v7758_v46, %v4370_v29 }
 0x446   : > { %v7768_v47 = vrot.slane %v4494_v49, 7  ;;  %v4480_v40 = vadd.f32 %v4464_v51, %v6883_v11 }
 0x447   : > { %v4479_v9 = vadd.f32 %v4463_v43, %v6880_v10  ;;  %v6004_v7 = vpop.f32.mrb[4].mxu1 }
 0x448   : > { %v4496_v63 = vmax.f32 %v4480_v40, 0.0  ;;  %v4466_v21 = vadd.f32 %v6004_v7, %v7758_v46  ;;  %v4380_v25 = vpop.f32.mrb[5].mxu1  ;;  %v4714_v33 = vsel %vm4544_vm3, %v7768_v47, %v7765_v59  ;;  %v4684_v11 = vsel %vm4541_vm4, %v7768_v47, %v7765_v59 }
 0x449   : > { %v4495_v30 = vmax.f32 %v4479_v9, 0.0  ;;  %v4465_v42 = vadd.f32 %v7758_v46, %v4380_v25  ;;  %4726 = vrot.lane.b32.xlu0 %v4714_v33, %s6591_s10  ;;  %v4654_v10 = vsel %vm4538_vm5, %v7768_v47, %v7765_v59  ;;  %v4624_v34 = vsel %vm4535_vm6, %v7768_v47, %v7765_v59 }
 0x44a   : > { %v4482_v62 = vadd.f32 %v4466_v21, %v6896_v13  ;;  %v4594_v37 = vsel %vm4532_vm8, %v7768_v47, %v7765_v59  ;;  %v4564_v39 = vsel %vm4529_vm9, %v7768_v47, %v7765_v59  ;;  %v7800_v52 = vsel %vm4526_vm7, %v7768_v47, %v7765_v59 }
 0x44b   : > { %v7794_v41 = vrot.slane %v4495_v30, 6  ;;  %v4481_v50 = vadd.f32 %v4465_v42, %v6893_v12  ;;  %v6007_v53 = vpop.f32.mrb[6].mxu1  ;;  %v7802_v55 = vrot.slane %v4496_v63, 5 }
 0x44c   : > { %v4498_v13 = vmax.f32 %v4482_v62, 0.0  ;;  %v4468_v1 = vadd.f32 %v6007_v53, %v7758_v46  ;;  %v4390_v3 = vpop.f32.mrb[7].mxu1 }
 0x44d   : > { %v4497_v4 = vmax.f32 %v4481_v50, 0.0  ;;  %v4467_v61 = vadd.f32 %v7758_v46, %v4390_v3  ;;  %v4685_v5 = vsel %vm4544_vm3, %v7794_v41, %v4684_v11  ;;  %v4655_v12 = vsel %vm4541_vm4, %v7794_v41, %v4654_v10 }
 0x44e   : > { %v7810_v6 = vrot.slane %v4498_v13, 3  ;;  %v4484_v44 = vadd.f32 %v4468_v1, %v6979_v35  ;;  %4696 = vrot.lane.b32.xlu0 %v4685_v5, %s6592_s28  ;;  %v4656_v32 = vsel %vm4544_vm3, %v7802_v55, %v4655_v12  ;;  %v4625_v54 = vsel %vm4538_vm5, %v7794_v41, %v4624_v34 }
 0x44f   : > { %v7818_v22 = vrot.slane %v4497_v4, 4  ;;  %v4483_v0 = vadd.f32 %v4467_v61, %v6899_v14  ;;  %v6010_v2 = vpop.f32.mrb[8].mxu1  ;;  %v4626_v23 = vsel %vm4541_vm4, %v7802_v55, %v4625_v54  ;;  %v4595_v35 = vsel %vm4535_vm6, %v7794_v41, %v4594_v37  ;;  %v8200_v61 = vld [vmem:[#allocation14_spill] sm:$0xff]  ;;  %v8201_v54 = vld [vmem:[#allocation13_spill] sm:$0xff] }
 0x450   : > { %v4500_v58 = vmax.f32 %v4484_v44, 0.0  ;;  %v4470_v36 = vadd.f32 %v6010_v2, %v7758_v46  ;;  %v4400_v20 = vpop.f32.mrb[9].mxu1  ;;  %v4596_v56 = vsel %vm4538_vm5, %v7802_v55, %v4595_v35  ;;  %v4565_v60 = vsel %vm4532_vm8, %v7794_v41, %v4564_v39 }
 0x451   : > { %v4499_v57 = vmax.f32 %v4483_v0, 0.0  ;;  %v4469_v14 = vadd.f32 %v7758_v46, %v4400_v20  ;;  %v4627_v24 = vsel %vm4544_vm3, %v7818_v22, %v4626_v23  ;;  %v4597_v8 = vsel %vm4541_vm4, %v7818_v22, %v4596_v56 }
 0x452   : > { %v7835_v38 = vrot.slane %v4500_v58, 1  ;;  %v4486_v48 = vadd.f32 %v4470_v36, %v6911_v16  ;;  %4666 = vrot.lane.b32.xlu0 %v4656_v32, %s6593_s12  ;;  %v4598_v26 = vsel %vm4544_vm3, %v7810_v6, %v4597_v8  ;;  %v4657_v27 = vsel %vm4526_vm7, %v7810_v6, %v7818_v22 }
 0x453   : > { %v7844_v28 = vrot.slane %v4499_v57, 2  ;;  %v4485_v19 = vadd.f32 %v4469_v14, %v6908_v15  ;;  %v6013_v45 = vpop.f32.mrb[10].mxu1  ;;  %v4686_v31 = vsel %vm4526_vm7, %v7818_v22, %v7802_v55  ;;  %v4566_v16 = vsel %vm4535_vm6, %v7802_v55, %v4565_v60 }
 0x454   : > { %v4502_v49 = vmax.f32 %v4486_v48, 0.0  ;;  %v4472_v51 = vadd.f32 %v6013_v45, %v7758_v46  ;;  %v4410_v29 = vpop.f32.mrb[11].mxu1  ;;  %v4687_v43 = vsel %vm4529_vm9, %v7810_v6, %v4686_v31  ;;  %v4567_v40 = vsel %vm4538_vm5, %v7818_v22, %v4566_v16  ;;  %v8202_v48 = vld [vmem:[#allocation16_spill] sm:$0xff]  ;;  %v8203_v45 = vld [vmem:[#allocation15_spill] sm:$0xff] }
 0x455   : > { %v7857_v9 = vmax.f32 %v4485_v19, 0.0  ;;  %v4471_v15 = vadd.f32 %v7758_v46, %v4410_v29  ;;  %v4599_v7 = vsel %vm4526_vm7, %v7835_v38, %v7844_v28  ;;  %v4628_v63 = vsel %vm4526_vm7, %v7844_v28, %v7810_v6 }
 0x456   : > { %v7866_v21 = vrot.slane %v4502_v49, 7  ;;  %v4488_v25 = vadd.f32 %v4472_v51, %v6921_v18  ;;  %4636 = vrot.lane.b32.xlu0 %v4627_v24, %s6594_s13  ;;  %4608 = vrot.lane.b32.xlu1 %v4599_v7, %s6595_s30  ;;  %v4629_v33 = vsel %vm4529_vm9, %v7835_v38, %v4628_v63  ;;  %v4658_v11 = vsel %vm4529_vm9, %v7844_v28, %v4657_v27 }
 0x457   : > { %v4487_v30 = vadd.f32 %v4471_v15, %v6918_v17  ;;  %v6016_v42 = vpop.f32.mrb[12].mxu1  ;;  %v4659_v10 = vsel %vm4532_vm8, %v7835_v38, %v4658_v11  ;;  %v4688_v18 = vsel %vm4532_vm8, %v7844_v28, %v4687_v43  ;;  %v4568_v34 = vsel %vm4541_vm4, %v7810_v6, %v4567_v40 }
 0x458   : > { %v4504_v62 = vmax.f32 %v4488_v25, 0.0  ;;  %v4474_v37 = vadd.f32 %v6016_v42, %v7758_v46  ;;  %v4420_v39 = vpop.f32.mrb[13].mxu1  ;;  %v4689_v50 = vsel %vm4535_vm6, %v7835_v38, %v4688_v18  ;;  %v4569_v17 = vsel %vm4544_vm3, %v7844_v28, %v4568_v34 }
 0x459   : > { %v4503_v53 = vmax.f32 %v4487_v30, 0.0  ;;  %v4473_v13 = vadd.f32 %v7758_v46, %v4420_v39  ;;  %v4715_v1 = vsel %vm4526_vm7, %v7802_v55, %v7794_v41  ;;  %v4720_v3 = vsel %vm4544_vm3, %v7866_v21, %v7857_v9 }
 0x45a   : > { %v7894_v4 = vrot.slane %v4504_v62, 5  ;;  %v4490_v5 = vadd.f32 %v4474_v37, %v8200_v61  ;;  %4606 = vrot.lane.b32.xlu0 %v4598_v26, %s6595_s30  ;;  %4638 = vrot.lane.b32.xlu1 %v4629_v33, %s6594_s13  ;;  %v4716_v12 = vsel %vm4529_vm9, %v7818_v22, %v4715_v1  ;;  %v4744_v44 = vsel %vm4526_vm7, %v7794_v41, %v7768_v47 }
 0x45b   : > { %v7904_v32 = vrot.slane %v4503_v53, 6  ;;  %v4489_v0 = vadd.f32 %v4473_v13, %v8201_v54  ;;  %v6019_v2 = vpop.f32.mrb[14].mxu1  ;;  %v4717_v23 = vsel %vm4532_vm8, %v7810_v6, %v4716_v12  ;;  %v4745_v35 = vsel %vm4529_vm9, %v7802_v55, %v4744_v44 }
 0x45c   : > { %v4506_v58 = vmax.f32 %v4490_v5, 0.0  ;;  %v4476_v36 = vadd.f32 %v6019_v2, %v7758_v46  ;;  %v4430_v20 = vpop.f32.mrb[15].mxu1  ;;  %v4718_v56 = vsel %vm4535_vm6, %v7844_v28, %v4717_v23  ;;  %v4746_v47 = vsel %vm4532_vm8, %v7818_v22, %v4745_v35 }
 0x45d   : > { %v4505_v60 = vmax.f32 %v4489_v0, 0.0  ;;  %v4475_v57 = vadd.f32 %v7758_v46, %v4430_v20  ;;  %v4719_v14 = vsel %vm4538_vm5, %v7835_v38, %v4718_v56  ;;  %v4747_v24 = vsel %vm4535_vm6, %v7810_v6, %v4746_v47 }
 0x45e   : > { %v7921_v8 = vrot.slane %v4506_v58, 3  ;;  %v4492_v26 = vadd.f32 %v4476_v36, %v8202_v48  ;;  %4578 = vrot.lane.b32.xlu0 %v7835_v38, %s6596_s11  ;;  %4668 = vrot.lane.b32.xlu1 %v4659_v10, %s6593_s12  ;;  %v4748_v27 = vsel %vm4538_vm5, %v7844_v28, %v4747_v24  ;;  %v4690_v46 = vsel %vm4541_vm4, %v7866_v21, %v7857_v9 }
 0x45f   : > { %v7932_v19 = vrot.slane %v4505_v60, 4  ;;  %v4491_v31 = vadd.f32 %v4475_v57, %v8203_v45  ;;  %v4749_v16 = vsel %vm4541_vm4, %v7835_v38, %v4748_v27  ;;  %v4691_v49 = vsel %vm4544_vm3, %v7904_v32, %v4690_v46 }
 0x460   : > { %v4508_v51 = vmax.f32 %v4492_v26, 0.0  ;;  %v4660_v29 = vsel %vm4538_vm5, %v7866_v21, %v7857_v9  ;;  %v4630_v43 = vsel %vm4535_vm6, %v7866_v21, %v7857_v9  ;;  %v4570_v40 = vsel %vm4529_vm9, %v7866_v21, %v7857_v9 }
 0x461   : > { %v4507_v15 = vmax.f32 %v4491_v31, 0.0  ;;  %v4661_v7 = vsel %vm4541_vm4, %v7904_v32, %v4660_v29  ;;  %v4631_v63 = vsel %vm4538_vm5, %v7904_v32, %v4630_v43  ;;  %v4571_v25 = vsel %vm4532_vm8, %v7904_v32, %v4570_v40 }
 0x462   : > { %v4558_v33 = vrot.slane %v4508_v51, 1  ;;  %4698 = vrot.lane.b32.xlu1 %v4689_v50, %s6592_s28  ;;  %4576 = vrot.lane.b32.xlu0 %v4569_v17, %s6596_s11  ;;  %v4662_v11 = vsel %vm4544_vm3, %v7894_v4, %v4661_v7  ;;  %v4632_v30 = vsel %vm4541_vm4, %v7894_v4, %v4631_v63  ;;  %v4572_v42 = vsel %vm4535_vm6, %v7894_v4, %v4571_v25 }
 0x463   : > { %v4556_v10 = vrot.slane %v4507_v15, 2  ;;  %v4633_v18 = vsel %vm4544_vm3, %v7932_v19, %v4632_v30  ;;  %v4573_v34 = vsel %vm4538_vm5, %v7932_v19, %v4572_v42  ;;  %v4600_v62 = vsel %vm4532_vm8, %v7866_v21, %v7857_v9 }
 0x464   : > { %v4574_v37 = vsel %vm4541_vm4, %v7921_v8, %v4573_v34  ;;  %v4601_v39 = vsel %vm4535_vm6, %v7904_v32, %v4600_v62  ;;  %v4663_v50 = vsel %vm4526_vm7, %v7921_v8, %v7932_v19  ;;  %v4692_v17 = vsel %vm4526_vm7, %v7932_v19, %v7894_v4 }
 0x465   : > { %v4575_v53 = vsel %vm4544_vm3, %v4556_v10, %v4574_v37  ;;  %v4602_v13 = vsel %vm4538_vm5, %v7894_v4, %v4601_v39  ;;  %v4605_v1 = vsel %vm4526_vm7, %v4558_v33, %v4556_v10  ;;  %v4634_v61 = vsel %vm4526_vm7, %v4556_v10, %v7921_v8 }
 0x466   : > { %4728 = vrot.lane.b32.xlu1 %v4719_v14, %s6591_s10  ;;  %4730 = vrot.lane.b32.xlu0 %v4720_v3, %s6591_s10  ;;  %v4603_v5 = vsel %vm4541_vm4, %v7932_v19, %v4602_v13  ;;  %v4635_v12 = vsel %vm4529_vm9, %v4558_v33, %v4634_v61  ;;  %v4664_v44 = vsel %vm4529_vm9, %v4556_v10, %v4663_v50 }
 0x467   : > { %v4604_v54 = vsel %vm4544_vm3, %v7921_v8, %v4603_v5  ;;  %v4665_v0 = vsel %vm4532_vm8, %v4558_v33, %v4664_v44  ;;  %v4693_v2 = vsel %vm4529_vm9, %v7921_v8, %v4692_v17  ;;  %v4721_v23 = vsel %vm4526_vm7, %v7894_v4, %v7904_v32 }
 0x468   : > { %v4694_v3 = vsel %vm4532_vm8, %v4556_v10, %v4693_v2  ;;  %v4722_v35 = vsel %vm4529_vm9, %v7932_v19, %v4721_v23  ;;  %v4750_v58 = vsel %vm4526_vm7, %v7904_v32, %v7866_v21  ;;  %v4530_v36 = vsel %vm4529_vm9, %v7794_v41, %v7800_v52 }
 0x469   : > { %v4695_v20 = vsel %vm4535_vm6, %v4558_v33, %v4694_v3  ;;  %v4723_v56 = vsel %vm4532_vm8, %v7921_v8, %v4722_v35  ;;  %v4751_v47 = vsel %vm4529_vm9, %v7894_v4, %v4750_v58  ;;  %v4533_v60 = vsel %vm4532_vm8, %v7802_v55, %v4530_v36 }
 0x46a   : > { %4758 = vrot.lane.b32.xlu1 %v4749_v16, %s6597_s7  ;;  %4700 = vrot.lane.b32.xlu0 %v4691_v49, %s6592_s28  ;;  %v4724_v57 = vsel %vm4535_vm6, %v4556_v10, %v4723_v56  ;;  %v4752_v41 = vsel %vm4532_vm8, %v7932_v19, %v4751_v47  ;;  %v4536_v52 = vsel %vm4535_vm6, %v7818_v22, %v4533_v60 }
 0x46b   : > { %v4725_v14 = vsel %vm4538_vm5, %v4558_v33, %v4724_v57  ;;  %v4753_v24 = vsel %vm4535_vm6, %v7921_v8, %v4752_v41  ;;  %v4539_v55 = vsel %vm4538_vm5, %v7810_v6, %v4536_v52  ;;  %v4547_v6 = vsel %vm4526_vm7, %v7866_v21, %v7857_v9 }
 0x46c   : > { %v4754_v48 = vsel %vm4538_vm5, %v4556_v10, %v4753_v24  ;;  %v4542_v26 = vsel %vm4541_vm4, %v7844_v28, %v4539_v55  ;;  %v4549_v22 = vsel %vm4529_vm9, %v7904_v32, %v4547_v6  ;;  %vm4768_vm7 = vcmask 1048455  }
 0x46d   : > { %v4755_v27 = vsel %vm4541_vm4, %v4558_v33, %v4754_v48  ;;  %v4545_v46 = vsel %vm4544_vm3, %v7835_v38, %v4542_v26  ;;  %v4551_v38 = vsel %vm4532_vm8, %v7894_v4, %v4549_v22 }
 0x46e   : > { %4670 = vrot.lane.b32.xlu0 %v4662_v11, %s6593_s12  ;;  %4582 = vrot.lane.b32.xlu1 %v4558_v33, %s6596_s11  ;;  %4562 = vst.msk [vmem:[%s8036_s6] sm:$0xff] %vm275_vm0, %v4545_v46  ;;  %v4553_v28 = vsel %vm4535_vm6, %v7932_v19, %v4551_v38  ;;  %vm4770_vm6 = vcmask 1047424  }
 0x46f   : > { %v4555_v45 = vsel %vm4538_vm5, %v7921_v8, %v4553_v28  ;;  %vm4738_vm5 = vcmask 917254  }
 0x470   : > { %v4557_v31 = vsel %vm4541_vm4, %v4556_v10, %v4555_v45  ;;  %vm4740_vm4 = vcmask 915200  }
 0x471   : > { %v4559_v21 = vsel %vm4544_vm3, %v4558_v33, %v4557_v31  ;;  %vm4710_vm3 = vcmask 782976  }
 0x472   : > { %4640 = vrot.lane.b32.xlu0 %v4633_v18, %s6594_s13  ;;  %4580 = vrot.lane.b32.xlu1 %v4575_v53, %s6596_s11  ;;  %4563 = vst.msk [vmem:[%s8036_s6 + $0x8] sm:$0xff] %vm275_vm0, %v4559_v21  ;;  %vm4678_vm0 = vcmask 654852  }
 0x476   : > { %4610 = vrot.lane.b32.xlu0 %v4604_v54, %s6595_s30  ;;  %4612 = vrot.lane.b32.xlu1 %v4605_v1, %s6595_s30 }
 0x47a   : > { %4756 = vrot.lane.b32.xlu0 %v7765_v59, %s6597_s7  ;;  %4642 = vrot.lane.b32.xlu1 %v4635_v12, %s6594_s13 }
 0x47e   : > { %4760 = vrot.lane.b32.xlu0 %v7857_v9, %s6597_s7  ;;  %4672 = vrot.lane.b32.xlu1 %v4665_v0, %s6593_s12 }
 0x482   : > { %4702 = vrot.lane.b32.xlu1 %v4695_v20, %s6592_s28  ;;  %s6517_s28 = sshll.u32 %s6598_s22, 4  ;;  %s6518_s28 = int_to_ptr.vmem [resolvable:$false] %s6517_s28 }
 0x483   : > { %s6519_s12 = scalar_lea.vmem %s6518_s28, 512  ;;  %p6520_p7 = scmp.lt.s32.totalorder %s8127_s9, %s6518_s28 }
 0x486   : > { %4732 = vrot.lane.b32.xlu1 %v4725_v14, %s6591_s10  ;;  %s6513_s10 = scalar_lea.vmem %s8127_s9, 256 }
 0x487   : > { %p6514_p11 = scmp.ne.s32.totalorder %s8127_s9, %s6513_s10  ;;  %p6521_p9 = scmp.lt.s32.totalorder %s6519_s12, %s6513_s10 }
 0x489   : > { %p6515_p2 = pnand %p6514_p11, %p8204_p0  ;;  %p6522_p12 = por %p6521_p9, %p6520_p7 }
 0x48a   : > { %4762 = vrot.lane.b32.xlu1 %v4755_v27, %s6597_s7 }
 0x48b   : > { %p6516_p3 = pneg %p6515_p2 }
 0x48d   : > { %p6523_p1 = pnand %p6522_p12, %p6516_p3 }
 0x4bb   : > { %v4727_v4 = vpop.permute.xlu0 %4726 }
 0x4c0   : > { %v4697_v32 = vpop.permute.xlu0 %4696 }
 0x4c4   : > { %v4667_v8 = vpop.permute.xlu0 %4666 }
 0x4c8   : > { %v4637_v19 = vpop.permute.xlu0 %4636  ;;  %v4609_v59 = vpop.permute.xlu1 %4608 }
 0x4cc   : > { %v4607_v16 = vpop.permute.xlu0 %4606  ;;  %v4639_v49 = vpop.permute.xlu1 %4638 }
 0x4d0   : > { %v4579_v9 = vpop.permute.xlu0 %4578  ;;  %v4669_v51 = vpop.permute.xlu1 %4668 }
 0x4d1   : > { %4591 = vst.msk [vmem:[%s8036_s6 + $0x7] sm:$0x1] %vm4590_vm10, %v4579_v9 }
 0x4d4   : > { %v4699_v29 = vpop.permute.xlu1 %4698  ;;  %v4577_v43 = vpop.permute.xlu0 %4576 }
 0x4d5   : > { %4589 = vst.msk [vmem:[%s8036_s6 - $0x1] sm:$0xfe] %vm4588_vm11, %v4577_v43 }
 0x4d6   : > { %4619 = vst.msk [vmem:[%s8036_s6 - $0x2] sm:$0xfc] %vm4618_vm12, %v4607_v16 }
 0x4d7   : > { %4621 = vst.msk [vmem:[%s8036_s6 + $0x6] sm:$0x3] %vm4620_vm13, %v4609_v59 }
 0x4d8   : > { %4649 = vst.msk [vmem:[%s8036_s6 - $0x3] sm:$0xf8] %vm4648_vm14, %v4637_v19  ;;  %v4729_v40 = vpop.permute.xlu1 %4728  ;;  %v4731_v15 = vpop.permute.xlu0 %4730 }
 0x4d9   : > { %4651 = vst.msk [vmem:[%s8036_s6 + $0x5] sm:$0x7] %vm4650_vm15, %v4639_v49 }
 0x4da   : > { %4679 = vst.msk [vmem:[%s8036_s6 - $0x4] sm:$0xf0] %vm4678_vm0, %v4667_v8 }
 0x4db   : > { %4681 = vst.msk [vmem:[%s8036_s6 + $0x4] sm:$0xf] %vm4680_vm1, %v4669_v51 }
 0x4dc   : > { %4709 = vst.msk [vmem:[%s8036_s6 - $0x5] sm:$0xe0] %vm4708_vm2, %v4697_v32  ;;  %v4759_v7 = vpop.permute.xlu1 %4758  ;;  %v4701_v63 = vpop.permute.xlu0 %4700 }
 0x4dd   : > { %4711 = vst.msk [vmem:[%s8036_s6 + $0x3] sm:$0x1f] %vm4710_vm3, %v4699_v29 }
 0x4de   : > { %4741 = vst.msk [vmem:[%s8036_s6 + $0x2] sm:$0x3f] %vm4740_vm4, %v4729_v40 }
 0x4df   : > { %4739 = vst.msk [vmem:[%s8036_s6 - $0x6] sm:$0xc0] %vm4738_vm5, %v4727_v4 }
 0x4e0   : > { %4771 = vst.msk [vmem:[%s8036_s6 + $0x1] sm:$0x7f] %vm4770_vm6, %v4759_v7  ;;  %v4671_v25 = vpop.permute.xlu0 %4670  ;;  %v4583_v33 = vpop.permute.xlu1 %4582 }
 0x4e1   : > { %4593 = vst.msk [vmem:[%s8036_s6 + $0xf] sm:$0x1] %vm4590_vm10, %v4583_v33 }
 0x4e4   : > { %v4641_v11 = vpop.permute.xlu0 %4640  ;;  %v4581_v30 = vpop.permute.xlu1 %4580 }
 0x4e5   : > { %4592 = vst.msk [vmem:[%s8036_s6 + $0x7] sm:$0xfe] %vm4588_vm11, %v4581_v30 }
 0x4e8   : > { %v4611_v42 = vpop.permute.xlu0 %4610  ;;  %v4613_v10 = vpop.permute.xlu1 %4612 }
 0x4e9   : > { %4622 = vst.msk [vmem:[%s8036_s6 + $0x6] sm:$0xfc] %vm4618_vm12, %v4611_v42 }
 0x4ea   : > { %4623 = vst.msk [vmem:[%s8036_s6 + $0xe] sm:$0x3] %vm4620_vm13, %v4613_v10 }
 0x4eb   : > { %4652 = vst.msk [vmem:[%s8036_s6 + $0x5] sm:$0xf8] %vm4648_vm14, %v4641_v11 }
 0x4ec   : > { %4682 = vst.msk [vmem:[%s8036_s6 + $0x4] sm:$0xf0] %vm4678_vm0, %v4671_v25  ;;  %v4757_v18 = vpop.permute.xlu0 %4756  ;;  %v4643_v34 = vpop.permute.xlu1 %4642 }
 0x4ed   : > { %4712 = vst.msk [vmem:[%s8036_s6 + $0x3] sm:$0xe0] %vm4708_vm2, %v4701_v63 }
 0x4ee   : > { %4742 = vst.msk [vmem:[%s8036_s6 + $0x2] sm:$0xc0] %vm4738_vm5, %v4731_v15 }
 0x4ef   : > { %4769 = vst.msk [vmem:[%s8036_s6 - $0x7] sm:$0x80] %vm4768_vm7, %v4757_v18 }
 0x4f0   : > { %4653 = vst.msk [vmem:[%s8036_s6 + $0xd] sm:$0x7] %vm4650_vm15, %v4643_v34  ;;  %v4761_v62 = vpop.permute.xlu0 %4760  ;;  %v4673_v37 = vpop.permute.xlu1 %4672 }
 0x4f1   : > { %4772 = vst.msk [vmem:[%s8036_s6 + $0x1] sm:$0x80] %vm4768_vm7, %v4761_v62 }
 0x4f2   : > { %4683 = vst.msk [vmem:[%s8036_s6 + $0xc] sm:$0xf] %vm4680_vm1, %v4673_v37 }
 0x4f4   : > { %v4703_v39 = vpop.permute.xlu1 %4702 }
 0x4f5   : > { %4713 = vst.msk [vmem:[%s8036_s6 + $0xb] sm:$0x1f] %vm4710_vm3, %v4703_v39 }
 0x4f8   : > { %v4733_v50 = vpop.permute.xlu1 %4732 }
 0x4f9   : > { %4743 = vst.msk [vmem:[%s8036_s6 + $0xa] sm:$0x3f] %vm4740_vm4, %v4733_v50 }
 0x4fc   : > { %v4763_v17 = vpop.permute.xlu1 %4762 }
 0x4fd   : > { %4773 = vst.msk [vmem:[%s8036_s6 + $0x9] sm:$0x7f] %vm4770_vm6, %v4763_v17 }
 0x4fe   : > { %6526 = shalt.err (!%p6523_p1)
}
 0x4ff   : > { %s6527_s13 = scalar_lea.hbm %s8125_s15, 256  ;;  %s6531_s17 = scalar_lea.hbm %s8178_s5, 512 }
 0x500   : > { %p6528_p13 = scmp.ne.s32.totalorder %s8125_s15, %s6527_s13  ;;  %p6532_p4 = scmp.lt.u32.totalorder %s8125_s15, %s8178_s5 }
 0x501   : > { %p6533_p5 = scmp.lt.u32.totalorder %s6531_s17, %s6527_s13  ;;  %p6535_p11 = scmp.lt.u32.totalorder %s6527_s13, %s8125_s15 }
 0x502   : > { %p6529_p6 = pnand %p6528_p13, %p8204_p0 }
 0x503   : > { %p6534_p8 = por %p6533_p5, %p6532_p4 }
 0x504   : > { %p6530_p10 = pneg %p6529_p6 }
 0x505   : > { %p6536_p2 = por %p6535_p11, %p6534_p8 }
 0x507   : > { %p6537_p3 = pnand %p6536_p2, %p6530_p10 }
 0x509   : > { %6540 = shalt.err (!%p6537_p3)
}
 0x50a   : > { %s6599_s8 = smov 128   ;;  %s6600_s24 = smov 8  }
 0x50b   : > { %6358 = dma.vmem_to_hbm [thread:$0]  (%p8204_p0), %s8127_s9, 256, %s8125_s15, %s4775_s16, %s6599_s8, %s6599_s8, %s6600_s24  }
 0x50c PF: > { %s4803_s26 = sand.u32 1, %s6571_s18   ;;  %p8205_p7 = scmp.ne.s32.totalorder %s8187_s25, 0 }
 0x50d   : > { %p8206_p9 = scmp.ge.s32.totalorder %s6583_s21, 2  ;;  %s4804_s10 = scalar_lea.sflag [#allocation5], %s4803_s26 }
 0x50f   : > { %p6372_p12 = pnand %p8206_p9, %p8205_p7 }
 0x511   : > { %6566 = dma.done.wait (!%p6372_p12), %s4804_s10, 256  }
 0x512   : > { %6568 = vsyncadd (!%p6372_p12), %s4804_s10, 4294967040  ;;  %p19_p1 = scmp.ge.s32.totalorder %s6747_s29, 4   ;;  %s8207_s18 = smov %s6575_s19 }
 0x513   : > { %s8208_s19 = smov %s6579_s20  ;;  %s8209_s20 = smov %s6763_s27 }
 0x514   : > { %s8210_s21 = smov %s6747_s29  ;;  %21 = sbr.rel (!%p19_p1) target bundleno = 6 (0x6), region = 112 }
 0x51b   :  { %4809 = vsyncpa [#allocation4], 1 }
 0x51c   :  { %4811 = vsyncpa [#allocation4 + $0x1], 1 }
 0x51d   :  { %4812 = vsyncpa [#allocation7], 1 }
 0x51e   :  { %4813 = vsyncpa [#allocation5], 1 }
 0x51f   :  { %4815 = vsyncpa [#allocation5 + $0x1], 1 }

</bundles_post_ra>
